<compile_context>
chip_gen: v6e
topology: v6e:2x2x1
jax: 0.10.0
libtpu: 0.0.40
codegen_flags: <defaults>
</compile_context>

<pallas_src>
import functools

import jax
import jax.numpy as jnp
import numpy as np
from jax import lax
from jax.experimental import pallas as pl
from jax.experimental.pallas import tpu as pltpu


def _make_divisible(v, divisor=8, min_val=None):
    if min_val is None:
        min_val = divisor
    new_v = max(min_val, int(v + divisor / 2) // divisor * divisor)
    if new_v < 0.9 * v:
        new_v += divisor
    return new_v


# ------------------------------ fused kernel --------------------------------

def _mbconv_kernel(x_ref, xt_ref, xb_ref, *rest, K, stride, pad, TH, W,
                   Ho_t, Wo, has_ib):
    """Fused expand(1x1) -> depthwise KxK -> project(1x1), all BN-folded.

    x_ref : [1, TH, W, Cin]   main row tile
    xt_ref: [1, pad, W, Cin]  rows just above the tile (edge-clamped)
    xb_ref: [1, pad, W, Cin]  rows just below the tile (edge-clamped)
    (w_ib [Cin,Cmid], b_ib [1,Cmid])   only if has_ib
    w_dw [K*K,Cmid], b_dw [1,Cmid], w_pl [Cmid,Cout], b_pl [1,Cout]
    o_ref : [1, Ho_t, Wo, Cout]
    mid_ref (scratch): [TH + 2*pad, W + 2*pad, Cmid] f32 VMEM
    """
    if has_ib:
        (w_ib_ref, b_ib_ref, w_dw_ref, b_dw_ref, w_pl_ref, b_pl_ref,
         o_ref, mid_ref) = rest
    else:
        (w_dw_ref, b_dw_ref, w_pl_ref, b_pl_ref, o_ref, mid_ref) = rest

    t = pl.program_id(1)
    n_row_tiles = pl.num_programs(1)
    Cmid = mid_ref.shape[-1]

    # Zero init supplies the 'same' zero padding along W and at the image
    # top/bottom edges (halo writes below are skipped there).
    mid_ref[...] = jnp.zeros(mid_ref.shape, mid_ref.dtype)

    def expand(x_block, rows):
        xm = x_block.reshape(rows * W, x_block.shape[-1])
        if has_ib:
            y = jnp.dot(xm, w_ib_ref[...], preferred_element_type=jnp.float32)
            y = y + b_ib_ref[...]
            y = jnp.clip(y, 0.0, 6.0)
        else:
            y = xm.astype(jnp.float32)
        return y.reshape(rows, W, Cmid)

    # Expand the main rows; recompute the expand for the (tiny) halo rows so
    # the expanded activation never round-trips through HBM.
    mid_ref[pad:pad + TH, pad:pad + W, :] = expand(x_ref[0], TH)

    @pl.when(t > 0)
    def _():
        mid_ref[0:pad, pad:pad + W, :] = expand(xt_ref[0], pad)

    @pl.when(t < n_row_tiles - 1)
    def _():
        mid_ref[pad + TH:2 * pad + TH, pad:pad + W, :] = expand(xb_ref[0], pad)

    # Depthwise KxK, taps unrolled at trace time; f32 VPU accumulation.
    # (Further micro-opt: move the kw shifts to pltpu.roll on the sublane axis.)
    mid = mid_ref[...]
    wdw = w_dw_ref[...]
    acc = jnp.zeros((Ho_t, Wo, Cmid), jnp.float32)
    for kh in range(K):
        for kw in range(K):
            if stride == 1:
                patch = mid[kh:kh + Ho_t, kw:kw + Wo, :]
            else:
                patch = mid[kh:kh + (Ho_t - 1) * stride + 1:stride,
                            kw:kw + (Wo - 1) * stride + 1:stride, :]
            acc = acc + patch * wdw[kh * K + kw]
    y = jnp.clip(acc + b_dw_ref[...], 0.0, 6.0)

    # 1x1 projection (+ folded BN bias), no activation.
    out = jnp.dot(y.reshape(Ho_t * Wo, Cmid).astype(w_pl_ref.dtype),
                  w_pl_ref[...], preferred_element_type=jnp.float32)
    out = out + b_pl_ref[...]
    o_ref[...] = out.reshape(1, Ho_t, Wo, out.shape[-1]).astype(o_ref.dtype)


# ----------------------------- kernel wrapper --------------------------------

def _pick_row_tile(H, pad, per_row_bytes, budget_bytes=10 << 20):
    """Largest divisor of H (multiple of pad) whose working set fits budget."""
    divs = [d for d in range(pad, H + 1, pad) if H % d == 0]
    if not divs:
        return H
    max_rows = max(1, budget_bytes // max(per_row_bytes, 1))
    fitting = [d for d in divs if d <= max_rows]
    if not fitting:
        return divs[0]
    smaller = [d for d in fitting if d <= H // 2]  # prefer >=2 tiles (pipeline)
    return max(smaller) if smaller else max(fitting)


def mbconv_fused(x_nhwc, w_ib, b_ib, w_dw, b_dw, w_pl, b_pl, *,
                 kernel_size, stride, has_ib):
    """x_nhwc: [N, H, W, Cin] -> [N, Ho, Wo, Cout] (channels-last)."""
    N, H, W, Cin = x_nhwc.shape
    K = kernel_size
    pad = K // 2
    Cmid = w_dw.shape[-1]
    Cout = w_pl.shape[-1]
    isz = x_nhwc.dtype.itemsize

    Ho = (H + 2 * pad - K) // stride + 1
    Wo = (W + 2 * pad - K) // stride + 1

    if stride == 1:
        per_row = (2 * W * Cin * isz              # double-buffered input rows
                   + (W + 2 * pad) * Cmid * 4     # VMEM mid scratch
                   + 2 * Wo * Cmid * 4            # DW accumulator headroom
                   + 2 * Wo * Cout * isz)         # double-buffered output rows
        TH = _pick_row_tile(H, pad, per_row)
        Ho_t, n_row_tiles = TH, H // TH
    else:
        # TODO(synk): strided depthwise keeps a single row tile (no halo math).
        TH, Ho_t, n_row_tiles = H, Ho, 1

    grid = (N, n_row_tiles)
    th_blocks = max(TH // pad, 1)

    x_main_spec = pl.BlockSpec((1, TH, W, Cin), lambda n, t: (n, t, 0, 0))
    x_top_spec = pl.BlockSpec(
        (1, pad, W, Cin),
        lambda n, t: (n, jnp.maximum(t * th_blocks - 1, 0), 0, 0))
    x_bot_spec = pl.BlockSpec(
        (1, pad, W, Cin),
        lambda n, t: (n, jnp.minimum((t + 1) * th_blocks, H // pad - 1), 0, 0))

    def rep(shape):  # whole-array operand, replicated over the grid
        return pl.BlockSpec(shape, lambda n, t: (0,) * len(shape))

    in_specs = [x_main_spec, x_top_spec, x_bot_spec]
    args = [x_nhwc, x_nhwc, x_nhwc]
    if has_ib:
        in_specs += [rep(w_ib.shape), rep(b_ib.shape)]
        args += [w_ib, b_ib]
    in_specs += [rep(w_dw.shape), rep(b_dw.shape),
                 rep(w_pl.shape), rep(b_pl.shape)]
    args += [w_dw, b_dw, w_pl, b_pl]

    out_spec = pl.BlockSpec((1, Ho_t, Wo, Cout), lambda n, t: (n, t, 0, 0))

    flops = 2 * N * Ho * Wo * Cmid * (K * K + Cout)
    if has_ib:
        flops += 2 * N * H * W * Cin * Cmid
    bytes_accessed = (x_nhwc.size * isz + N * Ho * Wo * Cout * isz
                      + sum(int(a.size) * a.dtype.itemsize for a in args[3:]))

    kernel = functools.partial(_mbconv_kernel, K=K, stride=stride, pad=pad,
                               TH=TH, W=W, Ho_t=Ho_t, Wo=Wo, has_ib=has_ib)

    return pl.pallas_call(
        kernel,
        out_shape=jax.ShapeDtypeStruct((N, Ho, Wo, Cout), x_nhwc.dtype),
        grid=grid,
        in_specs=in_specs,
        out_specs=out_spec,
        scratch_shapes=[
            pltpu.VMEM((TH + 2 * pad, W + 2 * pad, Cmid), jnp.float32)],
        compiler_params=pltpu.CompilerParams(
            dimension_semantics=("parallel", "parallel"),
            vmem_limit_bytes=32 * 1024 * 1024),
        cost_estimate=pl.CostEstimate(flops=int(flops), transcendentals=0,
                                      bytes_accessed=int(bytes_accessed)),
    )(*args)


# ------------------------------- MBConvLayer --------------------------------

def _fold_bn(gamma, beta, mean, var, eps=1e-5):
    scale = gamma / jnp.sqrt(var + eps)
    return scale, beta - mean * scale


class MBConvLayerPallas:
    CHANNEL_DIVISIBLE = 8

    def __init__(self, key, in_channels, out_channels, kernel_size=3, stride=1,
                 groups=1, expand_ratio=6, act_func='relu6', use_se=False):
        assert act_func == 'relu6'
        assert groups == 1
        # TODO(synk): SELayer branch (use_se=True: global avg-pool + 2 FC +
        # hsigmoid gate) is not implemented; module default is use_se=False.
        assert not use_se
        assert kernel_size % 2 == 1 and kernel_size >= 3, \
            "fused kernel supports odd kernel_size >= 3"
        self.kernel_size = kernel_size
        self.stride = stride
        mid = _make_divisible(round(in_channels * expand_ratio),
                              self.CHANNEL_DIVISIBLE)
        self.mid = mid
        self.has_ib = expand_ratio != 1
        if not self.has_ib:
            assert mid == in_channels

        ks = iter(jax.random.split(key, 16))

        def bn_params(k, c):
            k1, k2, k3, k4 = jax.random.split(k, 4)
            gamma = 1.0 + 0.1 * jax.random.normal(k1, (c,), jnp.float32)
            beta = 0.1 * jax.random.normal(k2, (c,), jnp.float32)
            mean = 0.1 * jax.random.normal(k3, (c,), jnp.float32)
            var = jnp.abs(jax.random.normal(k4, (c,), jnp.float32)) + 0.5
            return _fold_bn(gamma, beta, mean, var)

        if self.has_ib:
            self.w_ib = 0.1 * jax.random.normal(next(ks), (in_channels, mid),
                                                jnp.float32)
            self.ib_scale, self.ib_bias = bn_params(next(ks), mid)

        self.w_dw = 0.1 * jax.random.normal(next(ks),
                                            (kernel_size, kernel_size, mid),
                                            jnp.float32)
        self.dw_scale, self.dw_bias = bn_params(next(ks), mid)

        self.w_pl = 0.1 * jax.random.normal(next(ks), (mid, out_channels),
                                            jnp.float32)
        self.pl_scale, self.pl_bias = bn_params(next(ks), out_channels)

        # Fold BN scale into the conv weights (drops one VPU multiply per
        # element per stage inside the kernel); keep only the bias add.
        K = kernel_size
        if self.has_ib:
            self.w_ib_f = self.w_ib * self.ib_scale[None, :]
            self.b_ib_f = self.ib_bias.reshape(1, mid)
        self.w_dw_f = (self.w_dw * self.dw_scale[None, None, :]
                       ).reshape(K * K, mid)
        self.b_dw_f = self.dw_bias.reshape(1, mid)
        self.w_pl_f = self.w_pl * self.pl_scale[None, :]
        self.b_pl_f = self.pl_bias.reshape(1, out_channels)

    def apply_nhwc(self, x_nhwc, compute_dtype=jnp.float32):
        """Channels-last forward (avoids the NCHW<->NHWC boundary copies)."""
        x = x_nhwc.astype(compute_dtype)
        if self.has_ib:
            w_ib = self.w_ib_f.astype(compute_dtype)
            b_ib = self.b_ib_f
        else:
            w_ib, b_ib = None, None
        # Depthwise weights / all biases stay f32: the DW stage is pure VPU
        # math in f32 (also the right choice on v5e) at zero extra HBM cost.
        return mbconv_fused(x, w_ib, b_ib, self.w_dw_f, self.b_dw_f,
                            self.w_pl_f.astype(compute_dtype), self.b_pl_f,
                            kernel_size=self.kernel_size, stride=self.stride,
                            has_ib=self.has_ib)

    def __call__(self, x_nchw, compute_dtype=jnp.float32):
        x = jnp.transpose(x_nchw, (0, 2, 3, 1))      # NCHW -> NHWC
        y = self.apply_nhwc(x, compute_dtype)
        return jnp.transpose(y, (0, 3, 1, 2))        # NHWC -> NCHW


# --------------------------- pure-JAX reference ------------------------------

def _reference(layer, x_nchw):
    x = x_nchw
    dn = ('NCHW', 'OIHW', 'NCHW')
    if layer.has_ib:
        w = jnp.transpose(layer.w_ib)[:, :, None, None]
        x = lax.conv_general_dilated(x, w, (1, 1), 'VALID',
                                     dimension_numbers=dn)
        x = x * layer.ib_scale[None, :, None, None] + layer.ib_bias[None, :, None, None]
        x = jnp.clip(x, 0.0, 6.0)
    K = layer.kernel_size
    w = jnp.transpose(layer.w_dw, (2, 0, 1))[:, None, :, :]
    x = lax.conv_general_dilated(x, w, (layer.stride, layer.stride),
                                 [(K // 2, K // 2), (K // 2, K // 2)],
                                 dimension_numbers=dn,
                                 feature_group_count=layer.mid)
    x = x * layer.dw_scale[None, :, None, None] + layer.dw_bias[None, :, None, None]
    x = jnp.clip(x, 0.0, 6.0)
    w = jnp.transpose(layer.w_pl)[:, :, None, None]
    x = lax.conv_general_dilated(x, w, (1, 1), 'VALID', dimension_numbers=dn)
    x = x * layer.pl_scale[None, :, None, None] + layer.pl_bias[None, :, None, None]
    return x


if __name__ == "__main__":
    key = jax.random.PRNGKey(0)
    k_x, k_p = jax.random.split(key)

    # Small shapes: batch=2, in_channels=4, spatial=16x16, out_channels=8.
    x = jax.random.normal(k_x, (2, 4, 16, 16), jnp.float32)

    layer = MBConvLayerPallas(k_p, in_channels=4, out_channels=8,
                              kernel_size=3, stride=1, expand_ratio=6,
                              act_func='relu6', use_se=False)

    out = jax.block_until_ready(layer(x))
    ref = jax.block_until_ready(_reference(layer, x))
    assert out.shape == (2, 8, 16, 16), out.shape
    np.testing.assert_allclose(np.asarray(out), np.asarray(ref),
                               rtol=2e-4, atol=2e-4)

    # bf16 storage / MXU-input dtype path (v6e/v7x perf mode, f32 accumulation).
    out_bf16 = jax.block_until_ready(layer(x, compute_dtype=jnp.bfloat16))
    np.testing.assert_allclose(np.asarray(out_bf16.astype(jnp.float32)),
                               np.asarray(ref), rtol=1e-1, atol=1e-1)

    print("KERNEL_OK")
</pallas_src>

<mosaic_0001>
module attributes {stable_mosaic.version = 11 : i64} {
  func.func @_mbconv_kernel(%arg0: i32, %arg1: i32, %arg2: memref<1x8x16x4xf32, #tpu.memory_space<vmem>>, %arg3: memref<1x1x16x4xf32, #tpu.memory_space<vmem>>, %arg4: memref<1x1x16x4xf32, #tpu.memory_space<vmem>>, %arg5: memref<4x24xf32, #tpu.memory_space<vmem>>, %arg6: memref<1x24xf32, #tpu.memory_space<vmem>>, %arg7: memref<9x24xf32, #tpu.memory_space<vmem>>, %arg8: memref<1x24xf32, #tpu.memory_space<vmem>>, %arg9: memref<24x8xf32, #tpu.memory_space<vmem>>, %arg10: memref<1x8xf32, #tpu.memory_space<vmem>>, %arg11: memref<1x8x16x8xf32, #tpu.memory_space<vmem>>, %arg12: memref<10x18x24xf32, #tpu.memory_space<vmem>>) attributes {dimension_semantics = [#tpu.dimension_semantics<parallel>, #tpu.dimension_semantics<parallel>], iteration_bounds = array<i64: 2, 2>, scalar_prefetch = 0 : i64, scratch_operands = 1 : i64, tpu.core_type = #tpu.core_type<tc>, window_params = [{transform_indices = @transform_0, window_bounds = array<i64: 1, 8, 16, 4>}, {transform_indices = @transform_1, window_bounds = array<i64: 1, 1, 16, 4>}, {transform_indices = @transform_2, window_bounds = array<i64: 1, 1, 16, 4>}, {pipeline_mode = #tpu.pipeline_mode<synchronous>, transform_indices = @transform_3, window_bounds = array<i64: 4, 24>}, {pipeline_mode = #tpu.pipeline_mode<synchronous>, transform_indices = @transform_4, window_bounds = array<i64: 1, 24>}, {pipeline_mode = #tpu.pipeline_mode<synchronous>, transform_indices = @transform_5, window_bounds = array<i64: 9, 24>}, {pipeline_mode = #tpu.pipeline_mode<synchronous>, transform_indices = @transform_6, window_bounds = array<i64: 1, 24>}, {pipeline_mode = #tpu.pipeline_mode<synchronous>, transform_indices = @transform_7, window_bounds = array<i64: 24, 8>}, {pipeline_mode = #tpu.pipeline_mode<synchronous>, transform_indices = @transform_8, window_bounds = array<i64: 1, 8>}, {transform_indices = @transform_9, window_bounds = array<i64: 1, 8, 16, 8>}]} {
    %cst = arith.constant 0.000000e+00 : f32
    %0 = vector.broadcast %cst : f32 to vector<10x18x24xf32>
    %c0 = arith.constant 0 : index
    %c0_0 = arith.constant 0 : index
    %c0_1 = arith.constant 0 : index
    %1 = vector.load %arg12[%c0, %c0_0, %c0_1] : memref<10x18x24xf32, #tpu.memory_space<vmem>>, vector<10x18x24xf32>
    tpu.vector_store %arg12[%c0, %c0_0, %c0_1], %0 {strides = array<i32>} : memref<10x18x24xf32, #tpu.memory_space<vmem>>, vector<10x18x24xf32>,
    %c0_2 = arith.constant 0 : index
    %c0_3 = arith.constant 0 : index
    %c0_4 = arith.constant 0 : index
    %c0_5 = arith.constant 0 : index
    %2 = vector.load %arg2[%c0_2, %c0_3, %c0_4, %c0_5] : memref<1x8x16x4xf32, #tpu.memory_space<vmem>>, vector<1x8x16x4xf32>
    %3 = vector.shape_cast %2 : vector<1x8x16x4xf32> to vector<8x16x4xf32>
    %4 = vector.shape_cast %3 : vector<8x16x4xf32> to vector<128x4xf32>
    %c0_6 = arith.constant 0 : index
    %c0_7 = arith.constant 0 : index
    %5 = vector.load %arg5[%c0_6, %c0_7] : memref<4x24xf32, #tpu.memory_space<vmem>>, vector<4x24xf32>
    %cst_8 = arith.constant dense<0.000000e+00> : vector<128x24xf32>
    %6 = tpu.matmul %4, %5, %cst_8 {dimension_numbers = #tpu.dot_dimension_numbers<[1], [0], [0], [1], [0, 0, 1, 1], [], []>} : vector<128x4xf32>, vector<4x24xf32>, vector<128x24xf32> -> vector<128x24xf32>
    %c0_9 = arith.constant 0 : index
    %c0_10 = arith.constant 0 : index
    %7 = vector.load %arg6[%c0_9, %c0_10] : memref<1x24xf32, #tpu.memory_space<vmem>>, vector<1x24xf32>
    %8 = vector.broadcast %7 : vector<1x24xf32> to vector<128x24xf32>
    %9 = arith.addf %6, %8 : vector<128x24xf32>
    %cst_11 = arith.constant 0.000000e+00 : f32
    %cst_12 = arith.constant 6.000000e+00 : f32
    %10 = vector.broadcast %cst_11 : f32 to vector<128x24xf32>
    %11 = arith.maximumf %10, %9 : vector<128x24xf32>
    %12 = vector.broadcast %cst_12 : f32 to vector<128x24xf32>
    %13 = arith.minimumf %12, %11 : vector<128x24xf32>
    %14 = vector.shape_cast %13 : vector<128x24xf32> to vector<8x16x24xf32>
    %c1 = arith.constant 1 : index
    %c1_13 = arith.constant 1 : index
    %c0_14 = arith.constant 0 : index
    %15 = vector.load %arg12[%c1, %c1_13, %c0_14] : memref<10x18x24xf32, #tpu.memory_space<vmem>>, vector<8x16x24xf32>
    tpu.vector_store %arg12[%c1, %c1_13, %c0_14], %14 {strides = array<i32>} : memref<10x18x24xf32, #tpu.memory_space<vmem>>, vector<8x16x24xf32>,
    %c0_i32 = arith.constant 0 : i32
    %16 = arith.cmpi sgt, %arg1, %c0_i32 : i32
    %17 = arith.extui %16 : i1 to i32
    %c0_i32_15 = arith.constant 0 : i32
    %18 = arith.cmpi ne, %17, %c0_i32_15 : i32
    scf.if %18 {
      %c0_36 = arith.constant 0 : index
      %c0_37 = arith.constant 0 : index
      %c0_38 = arith.constant 0 : index
      %c0_39 = arith.constant 0 : index
      %104 = vector.load %arg3[%c0_36, %c0_37, %c0_38, %c0_39] : memref<1x1x16x4xf32, #tpu.memory_space<vmem>>, vector<1x1x16x4xf32>
      %105 = vector.shape_cast %104 : vector<1x1x16x4xf32> to vector<1x16x4xf32>
      %106 = vector.shape_cast %105 : vector<1x16x4xf32> to vector<16x4xf32>
      %c0_40 = arith.constant 0 : index
      %c0_41 = arith.constant 0 : index
      %107 = vector.load %arg5[%c0_40, %c0_41] : memref<4x24xf32, #tpu.memory_space<vmem>>, vector<4x24xf32>
      %cst_42 = arith.constant dense<0.000000e+00> : vector<16x24xf32>
      %108 = tpu.matmul %106, %107, %cst_42 {dimension_numbers = #tpu.dot_dimension_numbers<[1], [0], [0], [1], [0, 0, 1, 1], [], []>} : vector<16x4xf32>, vector<4x24xf32>, vector<16x24xf32> -> vector<16x24xf32>
      %c0_43 = arith.constant 0 : index
      %c0_44 = arith.constant 0 : index
      %109 = vector.load %arg6[%c0_43, %c0_44] : memref<1x24xf32, #tpu.memory_space<vmem>>, vector<1x24xf32>
      %110 = vector.broadcast %109 : vector<1x24xf32> to vector<16x24xf32>
      %111 = arith.addf %108, %110 : vector<16x24xf32>
      %cst_45 = arith.constant 0.000000e+00 : f32
      %cst_46 = arith.constant 6.000000e+00 : f32
      %112 = vector.broadcast %cst_45 : f32 to vector<16x24xf32>
      %113 = arith.maximumf %112, %111 : vector<16x24xf32>
      %114 = vector.broadcast %cst_46 : f32 to vector<16x24xf32>
      %115 = arith.minimumf %114, %113 : vector<16x24xf32>
      %116 = vector.shape_cast %115 : vector<16x24xf32> to vector<1x16x24xf32>
      %c0_47 = arith.constant 0 : index
      %c1_48 = arith.constant 1 : index
      %c0_49 = arith.constant 0 : index
      %117 = vector.load %arg12[%c0_47, %c1_48, %c0_49] : memref<10x18x24xf32, #tpu.memory_space<vmem>>, vector<1x16x24xf32>
      tpu.vector_store %arg12[%c0_47, %c1_48, %c0_49], %116 {strides = array<i32>} : memref<10x18x24xf32, #tpu.memory_space<vmem>>, vector<1x16x24xf32>,
    } else {
    }
    %c1_i32 = arith.constant 1 : i32
    %19 = arith.cmpi slt, %arg1, %c1_i32 : i32
    %20 = arith.extui %19 : i1 to i32
    %c0_i32_16 = arith.constant 0 : i32
    %21 = arith.cmpi ne, %20, %c0_i32_16 : i32
    scf.if %21 {
      %c0_36 = arith.constant 0 : index
      %c0_37 = arith.constant 0 : index
      %c0_38 = arith.constant 0 : index
      %c0_39 = arith.constant 0 : index
      %104 = vector.load %arg4[%c0_36, %c0_37, %c0_38, %c0_39] : memref<1x1x16x4xf32, #tpu.memory_space<vmem>>, vector<1x1x16x4xf32>
      %105 = vector.shape_cast %104 : vector<1x1x16x4xf32> to vector<1x16x4xf32>
      %106 = vector.shape_cast %105 : vector<1x16x4xf32> to vector<16x4xf32>
      %c0_40 = arith.constant 0 : index
      %c0_41 = arith.constant 0 : index
      %107 = vector.load %arg5[%c0_40, %c0_41] : memref<4x24xf32, #tpu.memory_space<vmem>>, vector<4x24xf32>
      %cst_42 = arith.constant dense<0.000000e+00> : vector<16x24xf32>
      %108 = tpu.matmul %106, %107, %cst_42 {dimension_numbers = #tpu.dot_dimension_numbers<[1], [0], [0], [1], [0, 0, 1, 1], [], []>} : vector<16x4xf32>, vector<4x24xf32>, vector<16x24xf32> -> vector<16x24xf32>
      %c0_43 = arith.constant 0 : index
      %c0_44 = arith.constant 0 : index
      %109 = vector.load %arg6[%c0_43, %c0_44] : memref<1x24xf32, #tpu.memory_space<vmem>>, vector<1x24xf32>
      %110 = vector.broadcast %109 : vector<1x24xf32> to vector<16x24xf32>
      %111 = arith.addf %108, %110 : vector<16x24xf32>
      %cst_45 = arith.constant 0.000000e+00 : f32
      %cst_46 = arith.constant 6.000000e+00 : f32
      %112 = vector.broadcast %cst_45 : f32 to vector<16x24xf32>
      %113 = arith.maximumf %112, %111 : vector<16x24xf32>
      %114 = vector.broadcast %cst_46 : f32 to vector<16x24xf32>
      %115 = arith.minimumf %114, %113 : vector<16x24xf32>
      %116 = vector.shape_cast %115 : vector<16x24xf32> to vector<1x16x24xf32>
      %c9 = arith.constant 9 : index
      %c1_47 = arith.constant 1 : index
      %c0_48 = arith.constant 0 : index
      %117 = vector.load %arg12[%c9, %c1_47, %c0_48] : memref<10x18x24xf32, #tpu.memory_space<vmem>>, vector<1x16x24xf32>
      tpu.vector_store %arg12[%c9, %c1_47, %c0_48], %116 {strides = array<i32>} : memref<10x18x24xf32, #tpu.memory_space<vmem>>, vector<1x16x24xf32>,
    } else {
    }
    %c0_17 = arith.constant 0 : index
    %c0_18 = arith.constant 0 : index
    %c0_19 = arith.constant 0 : index
    %22 = vector.load %arg12[%c0_17, %c0_18, %c0_19] : memref<10x18x24xf32, #tpu.memory_space<vmem>>, vector<10x18x24xf32>
    %c0_20 = arith.constant 0 : index
    %c0_21 = arith.constant 0 : index
    %23 = vector.load %arg7[%c0_20, %c0_21] : memref<9x24xf32, #tpu.memory_space<vmem>>, vector<9x24xf32>
    %cst_22 = arith.constant 0.000000e+00 : f32
    %24 = vector.broadcast %cst_22 : f32 to vector<8x16x24xf32>
    %25 = vector.extract_strided_slice %22 {offsets = [0, 0, 0], sizes = [8, 16, 24], strides = [1, 1, 1]} : vector<10x18x24xf32> to vector<8x16x24xf32>
    %26 = vector.extract_strided_slice %23 {offsets = [0, 0], sizes = [1, 24], strides = [1, 1]} : vector<9x24xf32> to vector<1x24xf32>
    %27 = vector.shape_cast %26 : vector<1x24xf32> to vector<24xf32>
    %28 = vector.shape_cast %27 : vector<24xf32> to vector<1x1x24xf32>
    %29 = vector.broadcast %28 : vector<1x1x24xf32> to vector<8x16x24xf32>
    %30 = arith.mulf %25, %29 : vector<8x16x24xf32>
    %31 = arith.addf %24, %30 : vector<8x16x24xf32>
    %32 = vector.extract_strided_slice %22 {offsets = [0, 1, 0], sizes = [8, 16, 24], strides = [1, 1, 1]} : vector<10x18x24xf32> to vector<8x16x24xf32>
    %33 = vector.extract_strided_slice %23 {offsets = [1, 0], sizes = [1, 24], strides = [1, 1]} : vector<9x24xf32> to vector<1x24xf32>
    %34 = vector.shape_cast %33 : vector<1x24xf32> to vector<24xf32>
    %35 = vector.shape_cast %34 : vector<24xf32> to vector<1x1x24xf32>
    %36 = vector.broadcast %35 : vector<1x1x24xf32> to vector<8x16x24xf32>
    %37 = arith.mulf %32, %36 : vector<8x16x24xf32>
    %38 = arith.addf %31, %37 : vector<8x16x24xf32>
    %39 = vector.extract_strided_slice %22 {offsets = [0, 2, 0], sizes = [8, 16, 24], strides = [1, 1, 1]} : vector<10x18x24xf32> to vector<8x16x24xf32>
    %40 = vector.extract_strided_slice %23 {offsets = [2, 0], sizes = [1, 24], strides = [1, 1]} : vector<9x24xf32> to vector<1x24xf32>
    %41 = vector.shape_cast %40 : vector<1x24xf32> to vector<24xf32>
    %42 = vector.shape_cast %41 : vector<24xf32> to vector<1x1x24xf32>
    %43 = vector.broadcast %42 : vector<1x1x24xf32> to vector<8x16x24xf32>
    %44 = arith.mulf %39, %43 : vector<8x16x24xf32>
    %45 = arith.addf %38, %44 : vector<8x16x24xf32>
    %46 = vector.extract_strided_slice %22 {offsets = [1, 0, 0], sizes = [8, 16, 24], strides = [1, 1, 1]} : vector<10x18x24xf32> to vector<8x16x24xf32>
    %47 = vector.extract_strided_slice %23 {offsets = [3, 0], sizes = [1, 24], strides = [1, 1]} : vector<9x24xf32> to vector<1x24xf32>
    %48 = vector.shape_cast %47 : vector<1x24xf32> to vector<24xf32>
    %49 = vector.shape_cast %48 : vector<24xf32> to vector<1x1x24xf32>
    %50 = vector.broadcast %49 : vector<1x1x24xf32> to vector<8x16x24xf32>
    %51 = arith.mulf %46, %50 : vector<8x16x24xf32>
    %52 = arith.addf %45, %51 : vector<8x16x24xf32>
    %53 = vector.extract_strided_slice %22 {offsets = [1, 1, 0], sizes = [8, 16, 24], strides = [1, 1, 1]} : vector<10x18x24xf32> to vector<8x16x24xf32>
    %54 = vector.extract_strided_slice %23 {offsets = [4, 0], sizes = [1, 24], strides = [1, 1]} : vector<9x24xf32> to vector<1x24xf32>
    %55 = vector.shape_cast %54 : vector<1x24xf32> to vector<24xf32>
    %56 = vector.shape_cast %55 : vector<24xf32> to vector<1x1x24xf32>
    %57 = vector.broadcast %56 : vector<1x1x24xf32> to vector<8x16x24xf32>
    %58 = arith.mulf %53, %57 : vector<8x16x24xf32>
    %59 = arith.addf %52, %58 : vector<8x16x24xf32>
    %60 = vector.extract_strided_slice %22 {offsets = [1, 2, 0], sizes = [8, 16, 24], strides = [1, 1, 1]} : vector<10x18x24xf32> to vector<8x16x24xf32>
    %61 = vector.extract_strided_slice %23 {offsets = [5, 0], sizes = [1, 24], strides = [1, 1]} : vector<9x24xf32> to vector<1x24xf32>
    %62 = vector.shape_cast %61 : vector<1x24xf32> to vector<24xf32>
    %63 = vector.shape_cast %62 : vector<24xf32> to vector<1x1x24xf32>
    %64 = vector.broadcast %63 : vector<1x1x24xf32> to vector<8x16x24xf32>
    %65 = arith.mulf %60, %64 : vector<8x16x24xf32>
    %66 = arith.addf %59, %65 : vector<8x16x24xf32>
    %67 = vector.extract_strided_slice %22 {offsets = [2, 0, 0], sizes = [8, 16, 24], strides = [1, 1, 1]} : vector<10x18x24xf32> to vector<8x16x24xf32>
    %68 = vector.extract_strided_slice %23 {offsets = [6, 0], sizes = [1, 24], strides = [1, 1]} : vector<9x24xf32> to vector<1x24xf32>
    %69 = vector.shape_cast %68 : vector<1x24xf32> to vector<24xf32>
    %70 = vector.shape_cast %69 : vector<24xf32> to vector<1x1x24xf32>
    %71 = vector.broadcast %70 : vector<1x1x24xf32> to vector<8x16x24xf32>
    %72 = arith.mulf %67, %71 : vector<8x16x24xf32>
    %73 = arith.addf %66, %72 : vector<8x16x24xf32>
    %74 = vector.extract_strided_slice %22 {offsets = [2, 1, 0], sizes = [8, 16, 24], strides = [1, 1, 1]} : vector<10x18x24xf32> to vector<8x16x24xf32>
    %75 = vector.extract_strided_slice %23 {offsets = [7, 0], sizes = [1, 24], strides = [1, 1]} : vector<9x24xf32> to vector<1x24xf32>
    %76 = vector.shape_cast %75 : vector<1x24xf32> to vector<24xf32>
    %77 = vector.shape_cast %76 : vector<24xf32> to vector<1x1x24xf32>
    %78 = vector.broadcast %77 : vector<1x1x24xf32> to vector<8x16x24xf32>
    %79 = arith.mulf %74, %78 : vector<8x16x24xf32>
    %80 = arith.addf %73, %79 : vector<8x16x24xf32>
    %81 = vector.extract_strided_slice %22 {offsets = [2, 2, 0], sizes = [8, 16, 24], strides = [1, 1, 1]} : vector<10x18x24xf32> to vector<8x16x24xf32>
    %82 = vector.extract_strided_slice %23 {offsets = [8, 0], sizes = [1, 24], strides = [1, 1]} : vector<9x24xf32> to vector<1x24xf32>
    %83 = vector.shape_cast %82 : vector<1x24xf32> to vector<24xf32>
    %84 = vector.shape_cast %83 : vector<24xf32> to vector<1x1x24xf32>
    %85 = vector.broadcast %84 : vector<1x1x24xf32> to vector<8x16x24xf32>
    %86 = arith.mulf %81, %85 : vector<8x16x24xf32>
    %87 = arith.addf %80, %86 : vector<8x16x24xf32>
    %c0_23 = arith.constant 0 : index
    %c0_24 = arith.constant 0 : index
    %88 = vector.load %arg8[%c0_23, %c0_24] : memref<1x24xf32, #tpu.memory_space<vmem>>, vector<1x24xf32>
    %89 = vector.shape_cast %88 : vector<1x24xf32> to vector<1x1x24xf32>
    %90 = vector.broadcast %89 : vector<1x1x24xf32> to vector<8x16x24xf32>
    %91 = arith.addf %87, %90 : vector<8x16x24xf32>
    %cst_25 = arith.constant 0.000000e+00 : f32
    %cst_26 = arith.constant 6.000000e+00 : f32
    %92 = vector.broadcast %cst_25 : f32 to vector<8x16x24xf32>
    %93 = arith.maximumf %92, %91 : vector<8x16x24xf32>
    %94 = vector.broadcast %cst_26 : f32 to vector<8x16x24xf32>
    %95 = arith.minimumf %94, %93 : vector<8x16x24xf32>
    %96 = vector.shape_cast %95 : vector<8x16x24xf32> to vector<128x24xf32>
    %c0_27 = arith.constant 0 : index
    %c0_28 = arith.constant 0 : index
    %97 = vector.load %arg9[%c0_27, %c0_28] : memref<24x8xf32, #tpu.memory_space<vmem>>, vector<24x8xf32>
    %cst_29 = arith.constant dense<0.000000e+00> : vector<128x8xf32>
    %98 = tpu.matmul %96, %97, %cst_29 {dimension_numbers = #tpu.dot_dimension_numbers<[1], [0], [0], [1], [0, 0, 1, 1], [], []>} : vector<128x24xf32>, vector<24x8xf32>, vector<128x8xf32> -> vector<128x8xf32>
    %c0_30 = arith.constant 0 : index
    %c0_31 = arith.constant 0 : index
    %99 = vector.load %arg10[%c0_30, %c0_31] : memref<1x8xf32, #tpu.memory_space<vmem>>, vector<1x8xf32>
    %100 = vector.broadcast %99 : vector<1x8xf32> to vector<128x8xf32>
    %101 = arith.addf %98, %100 : vector<128x8xf32>
    %102 = vector.shape_cast %101 : vector<128x8xf32> to vector<1x8x16x8xf32>
    %c0_32 = arith.constant 0 : index
    %c0_33 = arith.constant 0 : index
    %c0_34 = arith.constant 0 : index
    %c0_35 = arith.constant 0 : index
    %103 = vector.load %arg11[%c0_32, %c0_33, %c0_34, %c0_35] : memref<1x8x16x8xf32, #tpu.memory_space<vmem>>, vector<1x8x16x8xf32>
    tpu.vector_store %arg11[%c0_32, %c0_33, %c0_34, %c0_35], %102 {strides = array<i32>} : memref<1x8x16x8xf32, #tpu.memory_space<vmem>>, vector<1x8x16x8xf32>,
    return
  }
  func.func @transform_0(%arg0: i32, %arg1: i32) -> (i32, i32, i32, i32) {
    %c0_i32 = arith.constant 0 : i32
    %c0_i32_0 = arith.constant 0 : i32
    %c0_i32_1 = arith.constant 0 : i32
    return %arg0, %arg1, %c0_i32, %c0_i32_0 : i32, i32, i32, i32
  }
  func.func @transform_1(%arg0: i32, %arg1: i32) -> (i32, i32, i32, i32) {
    %c8_i32 = arith.constant 8 : i32
    %0 = arith.muli %arg1, %c8_i32 : i32
    %c1_i32 = arith.constant 1 : i32
    %1 = arith.subi %0, %c1_i32 : i32
    %c0_i32 = arith.constant 0 : i32
    %2 = arith.maxsi %1, %c0_i32 : i32
    %c0_i32_0 = arith.constant 0 : i32
    %c0_i32_1 = arith.constant 0 : i32
    %c0_i32_2 = arith.constant 0 : i32
    return %arg0, %2, %c0_i32_0, %c0_i32_1 : i32, i32, i32, i32
  }
  func.func @transform_2(%arg0: i32, %arg1: i32) -> (i32, i32, i32, i32) {
    %c1_i32 = arith.constant 1 : i32
    %0 = arith.addi %arg1, %c1_i32 : i32
    %c8_i32 = arith.constant 8 : i32
    %1 = arith.muli %0, %c8_i32 : i32
    %c15_i32 = arith.constant 15 : i32
    %2 = arith.minsi %1, %c15_i32 : i32
    %c0_i32 = arith.constant 0 : i32
    %c0_i32_0 = arith.constant 0 : i32
    %c0_i32_1 = arith.constant 0 : i32
    return %arg0, %2, %c0_i32, %c0_i32_0 : i32, i32, i32, i32
  }
  func.func @transform_3(%arg0: i32, %arg1: i32) -> (i32, i32) {
    %c0_i32 = arith.constant 0 : i32
    %c0_i32_0 = arith.constant 0 : i32
    %c0_i32_1 = arith.constant 0 : i32
    return %c0_i32, %c0_i32_0 : i32, i32
  }
  func.func @transform_4(%arg0: i32, %arg1: i32) -> (i32, i32) {
    %c0_i32 = arith.constant 0 : i32
    %c0_i32_0 = arith.constant 0 : i32
    %c0_i32_1 = arith.constant 0 : i32
    return %c0_i32, %c0_i32_0 : i32, i32
  }
  func.func @transform_5(%arg0: i32, %arg1: i32) -> (i32, i32) {
    %c0_i32 = arith.constant 0 : i32
    %c0_i32_0 = arith.constant 0 : i32
    %c0_i32_1 = arith.constant 0 : i32
    return %c0_i32, %c0_i32_0 : i32, i32
  }
  func.func @transform_6(%arg0: i32, %arg1: i32) -> (i32, i32) {
    %c0_i32 = arith.constant 0 : i32
    %c0_i32_0 = arith.constant 0 : i32
    %c0_i32_1 = arith.constant 0 : i32
    return %c0_i32, %c0_i32_0 : i32, i32
  }
  func.func @transform_7(%arg0: i32, %arg1: i32) -> (i32, i32) {
    %c0_i32 = arith.constant 0 : i32
    %c0_i32_0 = arith.constant 0 : i32
    %c0_i32_1 = arith.constant 0 : i32
    return %c0_i32, %c0_i32_0 : i32, i32
  }
  func.func @transform_8(%arg0: i32, %arg1: i32) -> (i32, i32) {
    %c0_i32 = arith.constant 0 : i32
    %c0_i32_0 = arith.constant 0 : i32
    %c0_i32_1 = arith.constant 0 : i32
    return %c0_i32, %c0_i32_0 : i32, i32
  }
  func.func @transform_9(%arg0: i32, %arg1: i32) -> (i32, i32, i32, i32) {
    %c0_i32 = arith.constant 0 : i32
    %c0_i32_0 = arith.constant 0 : i32
    %c0_i32_1 = arith.constant 0 : i32
    return %arg0, %arg1, %c0_i32, %c0_i32_0 : i32, i32, i32, i32
  }
}

</mosaic_0001>

<bundles_post_ra>
// kernel: tpu_custom_call.1
= control target key start
LH: loop header
LB: loop body
LE: loop exit
PB: predicated region body
PF: predicated region fallthrough
CT: control target
= control target key end

     0   :  { %s2660_s30 = smov 0   ;;  %s2662_s10 = smov 0   ;;  %s3861_s0 = inlined_call_operand.vmem [shape: f32[2,16,16,4], index: 0, kind: input, shape index: {}]   ;;  %s3862_s1 = inlined_call_operand.vmem [shape: f32[2,16,16,4], index: 1, kind: input, shape index: {}]   ;;  %s3863_s2 = inlined_call_operand.vmem [shape: f32[2,16,16,4], index: 2, kind: input, shape index: {}]   ;;  %s3864_s3 = inlined_call_operand.vmem [shape: f32[4,24], index: 3, kind: input, shape index: {}]   ;;  %s3865_s4 = inlined_call_operand.vmem [shape: f32[1,24], index: 4, kind: input, shape index: {}]   ;;  %s3866_s5 = inlined_call_operand.vmem [shape: f32[9,24], index: 5, kind: input, shape index: {}]   ;;  %s3867_s6 = inlined_call_operand.vmem [shape: f32[1,24], index: 6, kind: input, shape index: {}]   ;;  %s3868_s7 = inlined_call_operand.vmem [shape: f32[24,8], index: 7, kind: input, shape index: {}]   ;;  %s3869_s8 = inlined_call_operand.vmem [shape: f32[1,8], index: 8, kind: input, shape index: {}]   ;;  %s3870_s9 = inlined_call_operand.vmem [shape: f32[2,16,16,8], index: 9, kind: output, shape index: {}]  }
   0x1   :  { %s2664_s11 = smov 0   ;;  %s2666_s12 = smov 0  }
   0x2   :  { %s2668_s13 = smov 0  }
   0x3 LB: > { %s28_s14 = sadd.s32 1, %s2599_s11  ;;  %s31_s15 = sadd.s32 1, %s2603_s12  ;;  %s2607_s13 = sphi %s2668_s13, %s19_s13   ;;  %s2603_s12 = sphi %s2666_s12, %s3913_s12   ;;  %s2599_s11 = sphi %s2664_s11, %s3912_s11   ;;  %s2595_s10 = sphi %s2662_s10, %s3911_s10   ;;  %s2591_s30 = sphi %s2660_s30, %s3910_s30  }
   0x4   : > { %p29_p0 = scmp.ge.s32.totalorder %s28_s14, 2  ;;  %p2325_p1 = scmp.ge.s32.totalorder %s2607_s13, 1 }
   0x5   : > { %p373_p2 = scmp.lt.s32.totalorder %s2607_s13, 5 }
   0x6   : > { %s3915_s14 = smov (%p29_p0, %s28_s14), 0  ;;  %s3917_s15 = smov (!%p29_p0, %s31_s15), %s2603_s12 }
   0x7   : > { %p374_p3 = pnand %p2325_p1, %p373_p2  ;;  %p33_p4 = scmp.ge.s32.totalorder %s3917_s15, 2 }
   0x8   : > { %s2696_s18 = sshll.u32 (!%p374_p3), %s2591_s30, 3  ;;  %p446_p5 = scmp.lt.s32.totalorder (!%p374_p3), %s2595_s10, 1 }
   0x9   : > { %s3919_s15 = smov (%p33_p4, %s3917_s15), 0  ;;  %377 = sbr.rel (%p374_p3) target bundleno = 1031 (0x407), region = 56 }
   0xa   : > { %p448_p6 = scmp.lt.s32.totalorder (!%p374_p3), %s2696_s18, 15  ;;  %s2702_s19 = sadd.s32 (!%p374_p3), 4294967295, %s2696_s18 }
   0xb   : > { %p458_p7 = scmp.gt.s32.totalorder (!%p374_p3), %s2702_s19, 0  ;;  %p2332_p8 = scmp.lt.s32.totalorder (!%p374_p3), %s2702_s19, 15 }
   0xc   : > { %s2407_s24 = sadd.s32 (!%p374_p3), 8, %s2696_s18  ;;  %p2369_p10 = scmp.le.s32.totalorder (!%p374_p3), %s2591_s30, 0 }
   0xd   : > { %p2748_p9 = scmp.lt.s32.totalorder (!%p374_p3), %s2407_s24, 15 }
   0xe   : > { %v549_v0 = vld [vmem:[%s3864_s3] sm:$0xf]  ;;  %vm606_vm0 = vcmask 1043456   ;;  %vm501_vm1 = vcmask 195584   ;;  %vm504_vm2 = vcmask 189440   ;;  %s3921_s10 = smov (!%p446_p5, %s2595_s10), 1 }
   0xf   : > { %2450 = vmatprep.subr.msk.mxu0 %vm606_vm0, %v549_v0  ;;  %2516 = vmatprep.subr.msk.mxu1 %vm606_vm0, %v549_v0  ;;  %v2609_v1 = vmov 0.0   ;;  %s449_s20 = scalar_select %p448_p6, %s2696_s18, 15  ;;  %vm557_vm3 = vcmask 31744   ;;  %v2816_v18 = vld [vmem:[%s3865_s4] ss:$0 sm:$0xff] }
  0x10   : > { %2451 = vmatpush3.msk.msra.mxu0 %vm606_vm0, %v549_v0  ;;  %2517 = vmatpush3.msk.msra.mxu1 %vm606_vm0, %v549_v0  ;;  %502 = vst.msk [vmem:[#allocation2] sm:$0xff] %vm501_vm1, %v2609_v1  ;;  %503 = vst.msk [vmem:[#allocation2 + $0x8] sm:$0xff] %vm501_vm1, %v2609_v1  ;;  %s2742_s21 = sshll.u32 %s3921_s10, 5  ;;  %s3923_s24 = smov (!%p2748_p9, %s2407_s24), 15 }
  0x11   : > { %505 = vst.msk [vmem:[#allocation2 + $0x10] sm:$0x3] %vm504_vm2, %v2609_v1  ;;  %508 = vst.msk [vmem:[#allocation2 + $0x28] sm:$0x3] %vm504_vm2, %v2609_v1  ;;  %s2327_s22 = sshll.u32 %s449_s20, 1  ;;  %s3927_s24 = smov (!%p2748_p9, %s3923_s24), 15 }
  0x12   : > { %507 = vst.msk [vmem:[#allocation2 + $0x20] sm:$0xff] %vm501_vm1, %v2609_v1  ;;  %530 = vst.msk [vmem:[#allocation2 + $0xd8] sm:$0xff] %vm501_vm1, %v2609_v1  ;;  %s452_s23 = sadd.s32 %s2742_s21, %s2327_s22  ;;  %s2344_s22 = sshll.u32 %s3927_s24, 1 }
  0x13   : > { %531 = vst.msk [vmem:[#allocation2 + $0xe0] sm:$0xff] %vm501_vm1, %v2609_v1  ;;  %506 = vst.msk [vmem:[#allocation2 + $0x18] sm:$0xff] %vm501_vm1, %v2609_v1  ;;  %s2329_s25 = sshll.u32 %s452_s23, 3 }
  0x14   : > { %532 = vst.msk [vmem:[#allocation2 + $0xe8] sm:$0x3] %vm504_vm2, %v2609_v1  ;;  %511 = vst.msk [vmem:[#allocation2 + $0x40] sm:$0x3] %vm504_vm2, %v2609_v1  ;;  %s2755_s29 = scalar_lea.vmem %s3861_s0, %s2329_s25  ;;  %s2760_s17 = scalar_lea.vmem %s3870_s9, %s2329_s25 }
  0x15   : > { %509 = vst.msk [vmem:[#allocation2 + $0x30] sm:$0xff] %vm501_vm1, %v2609_v1  ;;  %510 = vst.msk [vmem:[#allocation2 + $0x38] sm:$0xff] %vm501_vm1, %v2609_v1  ;;  %s459_s18 = scalar_select %p458_p7, %s2702_s19, 0  ;;  %v533_v2 = vld [vmem:[%s2755_s29] sm:$0xff]  ;;  %v534_v4 = vld [vmem:[%s2755_s29 + $0x8] sm:$0xff] }
  0x16   : > { %512 = vst.msk [vmem:[#allocation2 + $0x48] sm:$0xff] %vm501_vm1, %v2609_v1  ;;  %513 = vst.msk [vmem:[#allocation2 + $0x50] sm:$0xff] %vm501_vm1, %v2609_v1  ;;  %v541_v3 = vld [vmem:[%s2755_s29 + $0x40] sm:$0xff]  ;;  %2452 = vmatprep.mubr.msk.f32.mxu0 %vm557_vm3, %v533_v2  ;;  %v542_v5 = vld [vmem:[%s2755_s29 + $0x48] sm:$0xff]  ;;  %s483_s25 = sadd.s32 %s2344_s22, %s2742_s21 }
  0x17   : > { %514 = vst.msk [vmem:[#allocation2 + $0x58] sm:$0x3] %vm504_vm2, %v2609_v1  ;;  %517 = vst.msk [vmem:[#allocation2 + $0x70] sm:$0x3] %vm504_vm2, %v2609_v1  ;;  %2464 = vmatprep.mubr.msk.f32.mxu1 %vm557_vm3, %v541_v3  ;;  %v535_v6 = vld [vmem:[%s2755_s29 + $0x10] sm:$0xff]  ;;  %s3925_s18 = smov (!%p2332_p8, %s459_s18), 15  ;;  %2453 = vmatmul.mubr.msk.f32.vlgmr.msra.gmra.mxu0 %vm557_vm3, %v534_v4 }
  0x18   : > { %515 = vst.msk [vmem:[#allocation2 + $0x60] sm:$0xff] %vm501_vm1, %v2609_v1  ;;  %516 = vst.msk [vmem:[#allocation2 + $0x68] sm:$0xff] %vm501_vm1, %v2609_v1  ;;  %v543_v7 = vld [vmem:[%s2755_s29 + $0x50] sm:$0xff]  ;;  %2465 = vmatmul.mubr.msk.f32.vlgmr.msra.gmra.mxu1 %vm557_vm3, %v542_v5  ;;  %2455 = vmatprep.mubr.msk.f32.mxu0 %vm557_vm3, %v535_v6  ;;  %v536_v8 = vld [vmem:[%s2755_s29 + $0x18] sm:$0xff]  ;;  %s2337_s20 = sshll.u32 %s3925_s18, 1  ;;  %s2346_s10 = sshll.u32 %s483_s25, 3 }
  0x19   : > { %518 = vst.msk [vmem:[#allocation2 + $0x78] sm:$0xff] %vm501_vm1, %v2609_v1  ;;  %519 = vst.msk [vmem:[#allocation2 + $0x80] sm:$0xff] %vm501_vm1, %v2609_v1  ;;  %2467 = vmatprep.mubr.msk.f32.mxu1 %vm557_vm3, %v543_v7  ;;  %v544_v9 = vld [vmem:[%s2755_s29 + $0x58] sm:$0xff]  ;;  %v537_v10 = vld [vmem:[%s2755_s29 + $0x20] sm:$0xff]  ;;  %s466_s19 = sadd.s32 %s2337_s20, %s2742_s21  ;;  %s2801_s16 = scalar_lea.vmem %s3863_s2, %s2346_s10 }
  0x1a   : > { %520 = vst.msk [vmem:[#allocation2 + $0x88] sm:$0x3] %vm504_vm2, %v2609_v1  ;;  %523 = vst.msk [vmem:[#allocation2 + $0xa0] sm:$0x3] %vm504_vm2, %v2609_v1  ;;  %v545_v11 = vld [vmem:[%s2755_s29 + $0x60] sm:$0xff]  ;;  %s2339_s23 = sshll.u32 %s466_s19, 3 }
  0x1b   : > { %521 = vst.msk [vmem:[#allocation2 + $0x90] sm:$0xff] %vm501_vm1, %v2609_v1  ;;  %522 = vst.msk [vmem:[#allocation2 + $0x98] sm:$0xff] %vm501_vm1, %v2609_v1  ;;  %2456 = vmatmul.mubr.msk.f32.gmra.mxu0 %vm557_vm3, %v536_v8  ;;  %s2792_s28 = scalar_lea.vmem %s3862_s1, %s2339_s23  ;;  %v538_v12 = vld [vmem:[%s2755_s29 + $0x28] sm:$0xff]  ;;  %v539_v14 = vld [vmem:[%s2755_s29 + $0x30] sm:$0xff] }
  0x1c   : > { %524 = vst.msk [vmem:[#allocation2 + $0xa8] sm:$0xff] %vm501_vm1, %v2609_v1  ;;  %525 = vst.msk [vmem:[#allocation2 + $0xb0] sm:$0xff] %vm501_vm1, %v2609_v1  ;;  %2468 = vmatmul.mubr.msk.f32.gmra.mxu1 %vm557_vm3, %v544_v9  ;;  %2458 = vmatprep.mubr.msk.f32.mxu0 %vm557_vm3, %v537_v10  ;;  %v546_v13 = vld [vmem:[%s2755_s29 + $0x68] sm:$0xff]  ;;  %v547_v15 = vld [vmem:[%s2755_s29 + $0x70] sm:$0xff] }
  0x1d   : > { %526 = vst.msk [vmem:[#allocation2 + $0xb8] sm:$0x3] %vm504_vm2, %v2609_v1  ;;  %529 = vst.msk [vmem:[#allocation2 + $0xd0] sm:$0x3] %vm504_vm2, %v2609_v1  ;;  %2470 = vmatprep.mubr.msk.f32.mxu1 %vm557_vm3, %v545_v11  ;;  %v540_v16 = vld [vmem:[%s2755_s29 + $0x38] sm:$0xff] }
  0x1e   : > { %527 = vst.msk [vmem:[#allocation2 + $0xc0] sm:$0xff] %vm501_vm1, %v2609_v1  ;;  %528 = vst.msk [vmem:[#allocation2 + $0xc8] sm:$0xff] %vm501_vm1, %v2609_v1  ;;  %v548_v17 = vld [vmem:[%s2755_s29 + $0x78] sm:$0xff] }
  0x1f   : > { %2459 = vmatmul.mubr.msk.f32.gmra.mxu0 %vm557_vm3, %v538_v12 }
  0x20   : > { %2471 = vmatmul.mubr.msk.f32.gmra.mxu1 %vm557_vm3, %v546_v13  ;;  %2461 = vmatprep.mubr.msk.f32.mxu0 %vm557_vm3, %v539_v14 }
  0x21   : > { %2473 = vmatprep.mubr.msk.f32.mxu1 %vm557_vm3, %v547_v15 }
  0x23   : > { %2462 = vmatmul.mubr.msk.f32.gmra.mxu0 %vm557_vm3, %v540_v16 }
  0x24   : > { %2474 = vmatmul.mubr.msk.f32.gmra.mxu1 %vm557_vm3, %v548_v17 }
  0xd7   : > { %v2454_v19 = vpop.f32.mrf.mxu0 }
  0xd8   : > { %v2466_v20 = vpop.f32.mrf.mxu1  ;;  %v682_v21 = vadd.f32 %v2454_v19, %v2816_v18 }
  0xd9   : > { %v722_v22 = vadd.f32 %v2466_v20, %v2816_v18  ;;  %v676_v23 = vpop.f32.mrf.mxu0 }
  0xda   : > { %v716_v24 = vpop.f32.mrf.mxu1  ;;  %v756_v25 = vmax.f32 %v682_v21, 0.0  ;;  %v677_v27 = vadd.f32 %v2816_v18, %v676_v23 }
  0xdb   : > { %v764_v26 = vmax.f32 %v722_v22, 0.0  ;;  %v717_v28 = vadd.f32 %v2816_v18, %v716_v24  ;;  %v2457_v29 = vpop.f32.mrf.mxu0 }
  0xdc   : > { %v2469_v30 = vpop.f32.mrf.mxu1  ;;  %v772_v31 = vmin.f32 %v756_v25, 6.0  ;;  %v755_v33 = vmax.f32 %v677_v27, 0.0  ;;  %v692_v35 = vadd.f32 %v2457_v29, %v2816_v18 }
  0xdd   : > { %v780_v32 = vmin.f32 %v764_v26, 6.0  ;;  %v763_v34 = vmax.f32 %v717_v28, 0.0  ;;  %v732_v36 = vadd.f32 %v2469_v30, %v2816_v18  ;;  %v686_v37 = vpop.f32.mrf.mxu0 }
  0xde   : > { %v726_v38 = vpop.f32.mrf.mxu1  ;;  %789 = vst.msk [vmem:[#allocation2 + $0x21] sm:$0xff] %vm501_vm1, %v772_v31  ;;  %v771_v39 = vmin.f32 %v755_v33, 6.0  ;;  %v687_v41 = vadd.f32 %v2816_v18, %v686_v37  ;;  %v758_v43 = vmax.f32 %v692_v35, 0.0 }
  0xdf   : > { %797 = vst.msk [vmem:[#allocation2 + $0x81] sm:$0xff] %vm501_vm1, %v780_v32  ;;  %v779_v40 = vmin.f32 %v763_v34, 6.0  ;;  %v727_v42 = vadd.f32 %v2816_v18, %v726_v38  ;;  %v766_v44 = vmax.f32 %v732_v36, 0.0  ;;  %v2460_v45 = vpop.f32.mrf.mxu0 }
  0xe0   : > { %v2472_v46 = vpop.f32.mrf.mxu1  ;;  %788 = vst.msk [vmem:[#allocation2 + $0x19] sm:$0xff] %vm501_vm1, %v771_v39  ;;  %v757_v47 = vmax.f32 %v687_v41, 0.0  ;;  %v702_v49 = vadd.f32 %v2460_v45, %v2816_v18  ;;  %v774_v51 = vmin.f32 %v758_v43, 6.0 }
  0xe1   : > { %796 = vst.msk [vmem:[#allocation2 + $0x79] sm:$0xff] %vm501_vm1, %v779_v40  ;;  %v765_v48 = vmax.f32 %v727_v42, 0.0  ;;  %v742_v50 = vadd.f32 %v2472_v46, %v2816_v18  ;;  %v782_v52 = vmin.f32 %v766_v44, 6.0  ;;  %v696_v53 = vpop.f32.mrf.mxu0 }
  0xe2   : > { %v736_v54 = vpop.f32.mrf.mxu1  ;;  %v773_v55 = vmin.f32 %v757_v47, 6.0  ;;  %v760_v57 = vmax.f32 %v702_v49, 0.0  ;;  %791 = vst.msk [vmem:[#allocation2 + $0x39] sm:$0xff] %vm501_vm1, %v774_v51  ;;  %v697_v59 = vadd.f32 %v2816_v18, %v696_v53 }
  0xe3   : > { %v781_v56 = vmin.f32 %v765_v48, 6.0  ;;  %v768_v58 = vmax.f32 %v742_v50, 0.0  ;;  %799 = vst.msk [vmem:[#allocation2 + $0x99] sm:$0xff] %vm501_vm1, %v782_v52  ;;  %v737_v60 = vadd.f32 %v2816_v18, %v736_v54  ;;  %v2463_v61 = vpop.f32.mrf.mxu0 }
  0xe4   : > { %v2475_v62 = vpop.f32.mrf.mxu1  ;;  %790 = vst.msk [vmem:[#allocation2 + $0x31] sm:$0xff] %vm501_vm1, %v773_v55  ;;  %v776_v63 = vmin.f32 %v760_v57, 6.0  ;;  %v712_v1 = vadd.f32 %v2463_v61, %v2816_v18  ;;  %v759_v3 = vmax.f32 %v697_v59, 0.0 }
  0xe5   : > { %798 = vst.msk [vmem:[#allocation2 + $0x91] sm:$0xff] %vm501_vm1, %v781_v56  ;;  %v784_v0 = vmin.f32 %v768_v58, 6.0  ;;  %v752_v2 = vadd.f32 %v2475_v62, %v2816_v18  ;;  %v767_v4 = vmax.f32 %v737_v60, 0.0  ;;  %v706_v5 = vpop.f32.mrf.mxu0 }
  0xe6   : > { %v746_v6 = vpop.f32.mrf.mxu1  ;;  %793 = vst.msk [vmem:[#allocation2 + $0x51] sm:$0xff] %vm501_vm1, %v776_v63  ;;  %v762_v7 = vmax.f32 %v712_v1, 0.0  ;;  %v707_v9 = vadd.f32 %v2816_v18, %v706_v5  ;;  %v775_v11 = vmin.f32 %v759_v3, 6.0 }
  0xe7   : > { %801 = vst.msk [vmem:[#allocation2 + $0xb1] sm:$0xff] %vm501_vm1, %v784_v0  ;;  %v770_v8 = vmax.f32 %v752_v2, 0.0  ;;  %v747_v10 = vadd.f32 %v2816_v18, %v746_v6  ;;  %v783_v12 = vmin.f32 %v767_v4, 6.0 }
  0xe8   : > { %v778_v13 = vmin.f32 %v762_v7, 6.0  ;;  %v761_v15 = vmax.f32 %v707_v9, 0.0  ;;  %792 = vst.msk [vmem:[#allocation2 + $0x49] sm:$0xff] %vm501_vm1, %v775_v11 }
  0xe9   : > { %v786_v14 = vmin.f32 %v770_v8, 6.0  ;;  %v769_v16 = vmax.f32 %v747_v10, 0.0  ;;  %800 = vst.msk [vmem:[#allocation2 + $0xa9] sm:$0xff] %vm501_vm1, %v783_v12  ;;  %807 = sbr.rel (%p2369_p10) target bundleno = 443 (0x1bb), region = 60 }
  0xea   : > { %795 = vst.msk [vmem:[#allocation2 + $0x69] sm:$0xff] %vm501_vm1, %v778_v13  ;;  %v777_v17 = vmin.f32 %v761_v15, 6.0 }
  0xeb   : > { %803 = vst.msk [vmem:[#allocation2 + $0xc9] sm:$0xff] %vm501_vm1, %v786_v14  ;;  %v785_v19 = vmin.f32 %v769_v16, 6.0 }
  0xec   : > { %794 = vst.msk [vmem:[#allocation2 + $0x61] sm:$0xff] %vm501_vm1, %v777_v17 }
  0xed   : > { %802 = vst.msk [vmem:[#allocation2 + $0xc1] sm:$0xff] %vm501_vm1, %v785_v19 }
  0xee   : > { %v810_v18 = vld [vmem:[%s3864_s3] sm:$0xf]  ;;  %v809_v21 = vld [vmem:[%s2792_s28 + $0x8] sm:$0xff] }
  0xef   : > { %v808_v20 = vld [vmem:[%s2792_s28] sm:$0xff]  ;;  %2476 = vmatprep.subr.msk.mxu0 %vm606_vm0, %v810_v18 }
  0xf0   : > { %2478 = vmatprep.mubr.msk.f32.mxu0 %vm557_vm3, %v808_v20  ;;  %2477 = vmatpush3.msk.msra.mxu0 %vm606_vm0, %v810_v18  ;;  %v2370_v22 = vld [vmem:[%s3865_s4] ss:$0 sm:$0xff] }
  0xf1   : > { %2479 = vmatmul.mubr.msk.f32.vlgmr.msra.gmra.mxu0 %vm557_vm3, %v809_v21 }
 0x1b1   : > { %v2480_v23 = vpop.f32.mrf.mxu0 }
 0x1b2   : > { %v899_v24 = vadd.f32 %v2480_v23, %v2370_v22 }
 0x1b3   : > { %v893_v25 = vpop.f32.mrf.mxu0 }
 0x1b4   : > { %v903_v26 = vmax.f32 %v899_v24, 0.0  ;;  %v894_v27 = vadd.f32 %v2370_v22, %v893_v25 }
 0x1b6   : > { %v905_v28 = vmin.f32 %v903_v26, 6.0  ;;  %v902_v29 = vmax.f32 %v894_v27, 0.0 }
 0x1b8   : > { %907 = vst.msk [vmem:[#allocation2 + $0x9] sm:$0xff] %vm501_vm1, %v905_v28  ;;  %v904_v30 = vmin.f32 %v902_v29, 6.0 }
 0x1ba   : > { %906 = vst.msk [vmem:[#allocation2 + $0x1] sm:$0xff] %vm501_vm1, %v904_v30 }
 0x1bb PF: > { %p2374_p11 = scmp.ge.s32.totalorder %s2591_s30, 1 }
 0x1bd   : > { %911 = sbr.rel (%p2374_p11) target bundleno = 655 (0x28f), region = 64 }
 0x1c2   : > { %v914_v31 = vld [vmem:[%s3864_s3] sm:$0xf]  ;;  %v913_v33 = vld [vmem:[%s2801_s16 + $0x8] sm:$0xff] }
 0x1c3   : > { %v912_v32 = vld [vmem:[%s2801_s16] sm:$0xff]  ;;  %2481 = vmatprep.subr.msk.mxu0 %vm606_vm0, %v914_v31 }
 0x1c4   : > { %2483 = vmatprep.mubr.msk.f32.mxu0 %vm557_vm3, %v912_v32  ;;  %2482 = vmatpush3.msk.msra.mxu0 %vm606_vm0, %v914_v31  ;;  %v2375_v34 = vld [vmem:[%s3865_s4] ss:$0 sm:$0xff] }
 0x1c5   : > { %2484 = vmatmul.mubr.msk.f32.vlgmr.msra.gmra.mxu0 %vm557_vm3, %v913_v33 }
 0x285   : > { %v2485_v35 = vpop.f32.mrf.mxu0 }
 0x286   : > { %v1003_v36 = vadd.f32 %v2485_v35, %v2375_v34 }
 0x287   : > { %v997_v37 = vpop.f32.mrf.mxu0 }
 0x288   : > { %v1007_v38 = vmax.f32 %v1003_v36, 0.0  ;;  %v998_v39 = vadd.f32 %v2375_v34, %v997_v37 }
 0x28a   : > { %v1009_v40 = vmin.f32 %v1007_v38, 6.0  ;;  %v1006_v41 = vmax.f32 %v998_v39, 0.0 }
 0x28c   : > { %1012 = vst.msk [vmem:[#allocation2 + $0xe1] sm:$0xff] %vm501_vm1, %v1009_v40  ;;  %v1008_v42 = vmin.f32 %v1006_v41, 6.0 }
 0x28e   : > { %1011 = vst.msk [vmem:[#allocation2 + $0xd9] sm:$0xff] %vm501_vm1, %v1008_v42 }
 0x28f PF: > { %v1956_v43 = vld [vmem:[%s3868_s7 + $0x10] sm:$0xff]  ;;  %v1955_v44 = vld [vmem:[%s3868_s7 + $0x8] sm:$0xff]  ;;  %v1045_v45 = vlaneseq  ;;  %v1954_v46 = vld [vmem:[%s3868_s7] sm:$0xff]  ;;  %vm1133_vm4 = vcmask 1046528   ;;  %vm1258_vm5 = vcmask 1045504   ;;  %vm2157_vm6 = vcmask 64512  }
 0x290   : > { %2486 = vmatprep.subr.mxu0 %v1956_v43  ;;  %2518 = vmatprep.subr.mxu1 %v1956_v43  ;;  %v1043_v48 = vld [vmem:[%s3866_s5] sm:$0xff]  ;;  %v2892_v54 = vld [vmem:[#allocation2 + $0x8] sm:$0xff]  ;;  %v2908_v2 = vld [vmem:[#allocation2 + $0x18] sm:$0xff] }
 0x291   : > { %2487 = vmatpush3.msra.mxu0 %v1956_v43  ;;  %2521 = vmatpush3.msra.mxu1 %v1956_v43  ;;  %v1046_v47 = vshrl.u32 %v1045_v45, 7  ;;  %v1013_v53 = vld [vmem:[#allocation2] sm:$0xff]  ;;  %v2934_v16 = vld [vmem:[#allocation2 + $0x30] sm:$0xff]  ;;  %v2939_v17 = vld [vmem:[%s3866_s5 + $0x8] ss:$0 sm:$0xff] }
 0x292   : > { %2488 = vmatprep.subr.mxu0 %v1955_v44  ;;  %2519 = vmatprep.subr.mxu1 %v1955_v44  ;;  %v2910_v3 = vld [vmem:[#allocation2 + $0x20] sm:$0xff]  ;;  %v2956_v27 = vld [vmem:[#allocation2 + $0x38] sm:$0xff]  ;;  %v1779_v34 = vmul.f32 %v2939_v17, %v2934_v16  ;;  %v2977_v36 = vld [vmem:[#allocation2 + $0x68] sm:$0xff] }
 0x293   : > { %2489 = vmatpush3.msra.mxu0 %v1955_v44  ;;  %2522 = vmatpush3.msra.mxu1 %v1955_v44  ;;  %v1047_v49 = vsub.s32 0, %v1046_v47  ;;  %v1083_v50 = vsub.s32 1, %v1046_v47  ;;  %v1208_v51 = vsub.s32 2, %v1046_v47  ;;  %v1333_v52 = vsub.s32 3, %v1046_v47  ;;  %v2954_v26 = vld [vmem:[#allocation2 + $0x60] sm:$0xff] }
 0x294   : > { %2490 = vmatprep.subr.mxu0 %v1954_v46  ;;  %2520 = vmatprep.subr.mxu1 %v1954_v46  ;;  %v1369_v55 = vsub.s32 4, %v1046_v47  ;;  %v1493_v56 = vsub.s32 5, %v1046_v47  ;;  %v1617_v57 = vsub.s32 6, %v1046_v47  ;;  %v1653_v61 = vsub.s32 7, %v1046_v47 }
 0x295   : > { %2491 = vmatpush3.msra.mxu0 %v1954_v46  ;;  %2523 = vmatpush3.msra.mxu1 %v1954_v46  ;;  %v2894_v58 = vrot.slane %v1043_v48, %v1047_v49  ;;  %v2896_v59 = vrot.slane %v1043_v48, %v1083_v50  ;;  %v2898_v60 = vrot.slane %v1043_v48, %v1208_v51  ;;  %v1827_v43 = vrot.slane %v1779_v34, 2  ;;  %v2988_v46 = vld [vmem:[#allocation2 + $0x78] sm:$0xff] }
 0x296   : > { %v2900_v62 = vrot.slane %v1043_v48, %v1333_v52  ;;  %v2902_v63 = vrot.slane %v1043_v48, %v1369_v55  ;;  %v2904_v0 = vrot.slane %v1043_v48, %v1493_v56  ;;  %v2906_v1 = vrot.slane %v1043_v48, %v1617_v57  ;;  %v3008_v56 = vld [vmem:[#allocation2 + $0x80] sm:$0xff] }
 0x297   : > { %v1049_v4 = vmul.f32 %v2894_v58, %v1013_v53  ;;  %v1085_v5 = vmul.f32 %v2896_v59, %v1013_v53  ;;  %v2916_v6 = vmul.f32 %v2896_v59, %v2892_v54  ;;  %v1210_v7 = vmul.f32 %v2898_v60, %v1013_v53 }
 0x298   : > { %v2921_v8 = vmul.f32 %v2898_v60, %v2892_v54  ;;  %v1335_v9 = vmul.f32 %v2900_v62, %v2908_v2  ;;  %v1371_v10 = vmul.f32 %v2902_v63, %v2908_v2  ;;  %v2929_v11 = vmul.f32 %v2902_v63, %v2910_v3 }
 0x299   : > { %v1134_v12 = vrot.slane %v1085_v5, 1  ;;  %v1135_v13 = vrot.slane %v2916_v6, 1  ;;  %v1259_v14 = vrot.slane %v1210_v7, 2  ;;  %v1495_v15 = vmul.f32 %v2904_v0, %v2908_v2  ;;  %v3013_v5 = vld [vmem:[#allocation2 + $0x90] sm:$0xff] }
 0x29a   : > { %v1260_v19 = vrot.slane %v2921_v8, 2  ;;  %v1419_v18 = vrot.slane %v1371_v10, 1  ;;  %v1420_v20 = vrot.slane %v2929_v11, 1  ;;  %v2945_v21 = vmul.f32 %v2904_v0, %v2910_v3 }
 0x29b   : > { %v1136_v22 = vsel %vm1133_vm4, %v1134_v12, %v1135_v13  ;;  %v1543_v23 = vrot.slane %v1495_v15, 2  ;;  %v1619_v24 = vmul.f32 %v2906_v1, %v2934_v16  ;;  %v2952_v25 = vrot.slane %v1043_v48, %v1653_v61 }
 0x29c   : > { %v1190_v28 = vadd.f32 %v1136_v22, %v1049_v4  ;;  %v1261_v29 = vsel %vm1258_vm5, %v1259_v14, %v1260_v19  ;;  %v1421_v30 = vsel %vm1133_vm4, %v1419_v18, %v1420_v20  ;;  %v1544_v31 = vrot.slane %v2945_v21, 2 }
 0x29d   : > { %v1655_v32 = vmul.f32 %v2952_v25, %v2934_v16  ;;  %v2969_v33 = vmul.f32 %v2952_v25, %v2956_v27  ;;  %v2975_v35 = vmul.f32 %v2939_v17, %v2956_v27  ;;  %v1057_v39 = vmul.f32 %v2894_v58, %v2954_v26 }
 0x29e   : > { %v1315_v37 = vadd.f32 %v1261_v29, %v1190_v28  ;;  %v1545_v38 = vsel %vm1258_vm5, %v1543_v23, %v1544_v31  ;;  %v1097_v40 = vmul.f32 %v2896_v59, %v2954_v26  ;;  %v2992_v47 = vmul.f32 %v2896_v59, %v2977_v36  ;;  %v3031_v23 = vld [vmem:[#allocation2 + $0x98] sm:$0xff] }
 0x29f   : > { %v1703_v41 = vrot.slane %v1655_v32, 1  ;;  %v1704_v42 = vrot.slane %v2969_v33, 1  ;;  %v1828_v44 = vrot.slane %v2975_v35, 2  ;;  %v1222_v49 = vmul.f32 %v2898_v60, %v2954_v26 }
 0x2a0   : > { %v1351_v45 = vadd.f32 %v1335_v9, %v1315_v37  ;;  %v1154_v48 = vrot.slane %v1097_v40, 1  ;;  %v3004_v52 = vmul.f32 %v2898_v60, %v2977_v36  ;;  %v1343_v53 = vmul.f32 %v2900_v62, %v2988_v46 }
 0x2a1   : > { %v1705_v50 = vsel %vm1133_vm4, %v1703_v41, %v1704_v42  ;;  %v1829_v51 = vsel %vm1258_vm5, %v1827_v43, %v1828_v44  ;;  %v1155_v57 = vrot.slane %v2992_v47, 1  ;;  %v1279_v61 = vrot.slane %v1222_v49, 2 }
 0x2a2   : > { %v1475_v55 = vadd.f32 %v1421_v30, %v1351_v45  ;;  %v1383_v4 = vmul.f32 %v2902_v63, %v2988_v46  ;;  %v3875_v7 = vrot.slane %v3004_v52, 2  ;;  %v3018_v9 = vmul.f32 %v2902_v63, %v3008_v56  ;;  %v1015_v45 = vld [vmem:[#allocation2 + $0x10] sm:$0x3] }
 0x2a3   : > { %v1507_v10 = vmul.f32 %v2904_v0, %v2988_v46  ;;  %v3024_v12 = vmul.f32 %v2904_v0, %v3008_v56  ;;  %v1156_v15 = vsel %vm1133_vm4, %v1154_v48, %v1155_v57  ;;  %v1627_v22 = vmul.f32 %v2906_v1, %v3013_v5 }
 0x2a4   : > { %v1599_v14 = vadd.f32 %v1545_v38, %v1475_v55  ;;  %v1439_v18 = vrot.slane %v1383_v4, 1  ;;  %v1198_v28 = vadd.f32 %v1156_v15, %v1057_v39  ;;  %v1281_v29 = vsel %vm1258_vm5, %v1279_v61, %v3875_v7  ;;  %v3060_v4 = vld [vmem:[%s3867_s6] ss:$0 sm:$0xff] }
 0x2a5   : > { %v3874_v30 = vrot.slane %v3018_v9, 1  ;;  %v1563_v32 = vrot.slane %v1507_v10, 2  ;;  %v3873_v37 = vrot.slane %v3024_v12, 2  ;;  %v1667_v38 = vmul.f32 %v2952_v25, %v3013_v5 }
 0x2a6   : > { %v1635_v34 = vadd.f32 %v1619_v24, %v1599_v14  ;;  %v3042_v40 = vmul.f32 %v2952_v25, %v3031_v23  ;;  %v1323_v41 = vadd.f32 %v1281_v29, %v1198_v28  ;;  %v1791_v43 = vmul.f32 %v2939_v17, %v3013_v5  ;;  %v3068_v29 = vld [vmem:[#allocation2 + $0x28] sm:$0x3] }
 0x2a7   : > { %v1441_v39 = vsel %vm1133_vm4, %v1439_v18, %v3874_v30  ;;  %v3051_v24 = vmul.f32 %v2939_v17, %v3031_v23  ;;  %v1565_v49 = vsel %vm1258_vm5, %v1563_v32, %v3873_v37  ;;  %v1723_v55 = vrot.slane %v1667_v38, 1  ;;  %v3094_v37 = vld [vmem:[#allocation2 + $0x70] sm:$0x3] }
 0x2a8   : > { %v1759_v48 = vadd.f32 %v1705_v50, %v1635_v34  ;;  %v3872_v61 = vrot.slane %v3042_v40, 1  ;;  %v1359_v10 = vadd.f32 %v1343_v53, %v1323_v41  ;;  %v1847_v14 = vrot.slane %v1791_v43, 2  ;;  %v3080_v43 = vld [vmem:[#allocation2 + $0x40] sm:$0x3] }
 0x2a9   : > { %v3871_v15 = vrot.slane %v3051_v24, 2  ;;  %v1050_v18 = vmul.f32 %v2894_v58, %v2892_v54  ;;  %v1087_v32 = vmul.f32 %v2896_v59, %v1015_v45  ;;  %v1212_v34 = vmul.f32 %v2898_v60, %v1015_v45 }
 0x2aa   : > { %v1883_v50 = vadd.f32 %v1829_v51, %v1759_v48  ;;  %v1725_v28 = vsel %vm1133_vm4, %v1723_v55, %v3872_v61  ;;  %v1483_v38 = vadd.f32 %v1441_v39, %v1359_v10  ;;  %v1336_v41 = vmul.f32 %v2900_v62, %v2910_v3 }
 0x2ab   : > { %v1849_v53 = vsel %vm1258_vm5, %v1847_v14, %v3871_v15  ;;  %v1373_v54 = vmul.f32 %v2902_v63, %v3068_v29  ;;  %v1137_v48 = vrot.slane %v1087_v32, 1  ;;  %v1262_v55 = vrot.slane %v1212_v34, 2 }
 0x2ac   : > { %v1906_v51 = vadd.f32 %v3060_v4, %v1883_v50  ;;  %v1497_v45 = vmul.f32 %v2904_v0, %v3068_v29  ;;  %v1607_v39 = vadd.f32 %v1565_v49, %v1483_v38  ;;  %v1620_v14 = vmul.f32 %v2906_v1, %v2956_v27 }
 0x2ad   : > { %v1422_v10 = vrot.slane %v1373_v54, 1  ;;  %v1657_v15 = vmul.f32 %v2952_v25, %v3080_v43  ;;  %v1138_v50 = vsel %vm1133_vm4, %v1135_v13, %v1137_v48  ;;  %v1263_v32 = vsel %vm1258_vm5, %v1260_v19, %v1262_v55 }
 0x2ae   : > { %v1922_v61 = vmax.f32 %v1906_v51, 0.0  ;;  %v1546_v34 = vrot.slane %v1497_v45, 2  ;;  %v1643_v49 = vadd.f32 %v1627_v22, %v1607_v39  ;;  %v1191_v38 = vadd.f32 %v1138_v50, %v1050_v18  ;;  %v3109_v22 = vld [vmem:[#allocation2 + $0x88] sm:$0x3] }
 0x2af   : > { %v1423_v54 = vsel %vm1133_vm4, %v1420_v20, %v1422_v10  ;;  %v1706_v30 = vrot.slane %v1657_v15, 1  ;;  %v1781_v8 = vmul.f32 %v2939_v17, %v3080_v43  ;;  %v1058_v13 = vmul.f32 %v2894_v58, %v2977_v36  ;;  %v3128_v10 = vld [vmem:[#allocation2 + $0xa0] sm:$0x3] }
 0x2b0   : > { %v1938_v7 = vmin.f32 %v1922_v61, 6.0  ;;  %v1547_v6 = vsel %vm1258_vm5, %v1544_v31, %v1546_v34  ;;  %v1767_v19 = vadd.f32 %v1725_v28, %v1643_v49  ;;  %v1316_v51 = vadd.f32 %v1263_v32, %v1191_v38 }
 0x2b1   : > { %v1707_v11 = vsel %vm1133_vm4, %v1704_v42, %v1706_v30  ;;  %v1099_v20 = vmul.f32 %v2896_v59, %v3094_v37  ;;  %v1830_v21 = vrot.slane %v1781_v8, 2  ;;  %v1224_v31 = vmul.f32 %v2898_v60, %v3094_v37 }
 0x2b2   : > { %2492 = vmatprep.mubr.msk.f32.mxu0 %vm501_vm1, %v1938_v7  ;;  %v1344_v61 = vmul.f32 %v2900_v62, %v3008_v56  ;;  %v1385_v15 = vmul.f32 %v2902_v63, %v3109_v22  ;;  %v1891_v33 = vadd.f32 %v1849_v53, %v1767_v19  ;;  %v1352_v18 = vadd.f32 %v1336_v41, %v1316_v51 }
 0x2b3   : > { %v1157_v42 = vrot.slane %v1099_v20, 1  ;;  %v1509_v30 = vmul.f32 %v2904_v0, %v3109_v22  ;;  %v1831_v7 = vsel %vm1258_vm5, %v1828_v44, %v1830_v21  ;;  %v1282_v28 = vrot.slane %v1224_v31, 2 }
 0x2b4   : > { %v1442_v48 = vrot.slane %v1385_v15, 1  ;;  %v1628_v55 = vmul.f32 %v2906_v1, %v3031_v23  ;;  %v1914_v45 = vadd.f32 %v3060_v4, %v1891_v33  ;;  %v1476_v39 = vadd.f32 %v1423_v54, %v1352_v18 }
 0x2b5   : > { %v1158_v53 = vsel %vm1133_vm4, %v1155_v57, %v1157_v42  ;;  %v1566_v41 = vrot.slane %v1509_v30, 2  ;;  %v3891_v35 = vrot.slane %v3004_v52, 2  ;;  %v3892_v32 = vrot.slane %v3018_v9, 1 }
 0x2b6   : > { %v1199_v50 = vadd.f32 %v1158_v53, %v1058_v13  ;;  %v1669_v49 = vmul.f32 %v2952_v25, %v3128_v10  ;;  %v1930_v38 = vmax.f32 %v1914_v45, 0.0  ;;  %v1600_v54 = vadd.f32 %v1547_v6, %v1476_v39 }
 0x2b7   : > { %v1283_v44 = vsel %vm1258_vm5, %v3891_v35, %v1282_v28  ;;  %v1443_v34 = vsel %vm1133_vm4, %v3892_v32, %v1442_v48  ;;  %v3893_v8 = vrot.slane %v3024_v12, 2  ;;  %v1793_v57 = vmul.f32 %v2939_v17, %v3128_v10 }
 0x2b8   : > { %v1324_v13 = vadd.f32 %v1283_v44, %v1199_v50  ;;  %v1726_v52 = vrot.slane %v1669_v49, 1  ;;  %v1051_v19 = vmul.f32 %v2894_v58, %v2908_v2  ;;  %v1088_v9 = vmul.f32 %v2896_v59, %v2908_v2 }
 0x2b9   : > { %v1567_v47 = vsel %vm1258_vm5, %v3893_v8, %v1566_v41  ;;  %v1946_v51 = vmin.f32 %v1930_v38, 6.0  ;;  %v1636_v20 = vadd.f32 %v1620_v14, %v1600_v54  ;;  %v1850_v21 = vrot.slane %v1793_v57, 2 }
 0x2ba   : > { %v3152_v6 = vmul.f32 %v2896_v59, %v2910_v3  ;;  %v1360_v12 = vadd.f32 %v1344_v61, %v1324_v13  ;;  %v3894_v31 = vrot.slane %v3042_v40, 1  ;;  %v1139_v33 = vrot.slane %v1088_v9, 1 }
 0x2bb   : > { %v1213_v18 = vmul.f32 %v2898_v60, %v2908_v2  ;;  %2504 = vmatprep.mubr.msk.f32.mxu1 %vm501_vm1, %v1946_v51  ;;  %v1760_v42 = vadd.f32 %v1707_v11, %v1636_v20  ;;  %v3895_v30 = vrot.slane %v3051_v24, 2  ;;  %v3166_v61 = vmul.f32 %v2898_v60, %v2910_v3 }
 0x2bc   : > { %v1727_v15 = vsel %vm1133_vm4, %v3894_v31, %v1726_v52  ;;  %v1140_v28 = vrot.slane %v3152_v6, 1  ;;  %v1484_v40 = vadd.f32 %v1443_v34, %v1360_v12  ;;  %v1337_v45 = vmul.f32 %v2900_v62, %v2934_v16  ;;  %v3183_v34 = vld [vmem:[#allocation2 + $0x48] sm:$0xff]  ;;  %v3195_v52 = vld [vmem:[#allocation2 + $0x50] sm:$0xff] }
 0x2bd   : > { %v1851_v14 = vsel %vm1258_vm5, %v3895_v30, %v1850_v21  ;;  %v1264_v48 = vrot.slane %v1213_v18, 2  ;;  %v1374_v2 = vmul.f32 %v2902_v63, %v2934_v16  ;;  %v1884_v39 = vadd.f32 %v1831_v7, %v1760_v42 }
 0x2be   : > { %v1141_v24 = vsel %vm1133_vm4, %v1139_v33, %v1140_v28  ;;  %v1265_v11 = vrot.slane %v3166_v61, 2  ;;  %v3178_v53 = vmul.f32 %v2902_v63, %v2956_v27  ;;  %v1608_v41 = vadd.f32 %v1567_v47, %v1484_v40 }
 0x2bf   : > { %v1192_v50 = vadd.f32 %v1141_v24, %v1051_v19  ;;  %v1424_v35 = vrot.slane %v1374_v2, 1  ;;  %v1498_v44 = vmul.f32 %v2904_v0, %v2934_v16  ;;  %v1907_v32 = vadd.f32 %v3060_v4, %v1884_v39 }
 0x2c0   : > { %v1266_v7 = vsel %vm1258_vm5, %v1264_v48, %v1265_v11  ;;  %v1425_v49 = vrot.slane %v3178_v53, 1  ;;  %v3191_v38 = vmul.f32 %v2904_v0, %v2956_v27  ;;  %v1644_v54 = vadd.f32 %v1628_v55, %v1608_v41 }
 0x2c1   : > { %v1317_v8 = vadd.f32 %v1266_v7, %v1192_v50  ;;  %v1548_v47 = vrot.slane %v1498_v44, 2  ;;  %v1621_v57 = vmul.f32 %v2906_v1, %v3183_v34  ;;  %v1923_v13 = vmax.f32 %v1907_v32, 0.0 }
 0x2c2   : > { %v1426_v19 = vsel %vm1133_vm4, %v1424_v35, %v1425_v49  ;;  %v1549_v9 = vrot.slane %v3191_v38, 2  ;;  %v1658_v51 = vmul.f32 %v2952_v25, %v3183_v34  ;;  %v1768_v20 = vadd.f32 %v1727_v15, %v1644_v54 }
 0x2c3   : > { %v1353_v21 = vadd.f32 %v1337_v45, %v1317_v8  ;;  %v3205_v55 = vmul.f32 %v2952_v25, %v3195_v52  ;;  %v1782_v12 = vmul.f32 %v2939_v17, %v3183_v34  ;;  %v1939_v31 = vmin.f32 %v1923_v13, 6.0 }
 0x2c4   : > { %v1550_v33 = vsel %vm1258_vm5, %v1548_v47, %v1549_v9  ;;  %v1708_v18 = vrot.slane %v1658_v51, 1  ;;  %v3214_v42 = vmul.f32 %v2939_v17, %v3195_v52  ;;  %v1892_v30 = vadd.f32 %v1851_v14, %v1768_v20 }
 0x2c5   : > { %v1477_v15 = vadd.f32 %v1426_v19, %v1353_v21  ;;  %v1709_v40 = vrot.slane %v3205_v55, 1  ;;  %v1832_v48 = vrot.slane %v1782_v12, 2  ;;  %2493 = vmatmul.mubr.msk.f32.vlgmr.msra.gmra.mxu0 %vm501_vm1, %v1939_v31  ;;  %v1059_v2 = vmul.f32 %v2894_v58, %v2988_v46 }
 0x2c6   : > { %v3882_v45 = vrot.slane %v3214_v42, 2  ;;  %v1100_v39 = vmul.f32 %v2896_v59, %v2988_v46  ;;  %v3225_v24 = vmul.f32 %v2896_v59, %v3008_v56  ;;  %v1915_v14 = vadd.f32 %v3060_v4, %v1892_v30  ;;  %v3255_v30 = vld [vmem:[#allocation2 + $0xa8] sm:$0xff] }
 0x2c7   : > { %v1601_v41 = vadd.f32 %v1550_v33, %v1477_v15  ;;  %v1710_v50 = vsel %vm1133_vm4, %v1708_v18, %v1709_v40  ;;  %v1225_v35 = vmul.f32 %v2898_v60, %v2988_v46  ;;  %v3239_v54 = vmul.f32 %v2898_v60, %v3008_v56 }
 0x2c8   : > { %v1834_v44 = vsel %vm1258_vm5, %v1832_v48, %v3882_v45  ;;  %v1159_v32 = vrot.slane %v1100_v39, 1  ;;  %v3878_v7 = vrot.slane %v3225_v24, 1  ;;  %v1931_v8 = vmax.f32 %v1915_v14, 0.0 }
 0x2c9   : > { %v1637_v47 = vadd.f32 %v1621_v57, %v1601_v41  ;;  %v1284_v13 = vrot.slane %v1225_v35, 2  ;;  %v1345_v19 = vmul.f32 %v2900_v62, %v3013_v5  ;;  %v3877_v20 = vrot.slane %v3239_v54, 2 }
 0x2ca   : > { %v1161_v51 = vsel %vm1133_vm4, %v1159_v32, %v3878_v7  ;;  %v1386_v21 = vmul.f32 %v2902_v63, %v3013_v5  ;;  %v3251_v12 = vmul.f32 %v2902_v63, %v3031_v23  ;;  %v1947_v31 = vmin.f32 %v1931_v8, 6.0 }
 0x2cb   : > { %v1761_v33 = vadd.f32 %v1710_v50, %v1637_v47  ;;  %v1200_v57 = vadd.f32 %v1161_v51, %v1059_v2  ;;  %v1510_v18 = vmul.f32 %v2904_v0, %v3013_v5  ;;  %v1286_v15 = vsel %vm1258_vm5, %v1284_v13, %v3877_v20  ;;  %v3266_v2 = vld [vmem:[#allocation2 + $0xb0] sm:$0xff] }
 0x2cc   : > { %v1444_v48 = vrot.slane %v1386_v21, 1  ;;  %v3876_v39 = vrot.slane %v3251_v12, 1  ;;  %v3263_v14 = vmul.f32 %v2904_v0, %v3031_v23  ;;  %2505 = vmatmul.mubr.msk.f32.vlgmr.msra.gmra.mxu1 %vm501_vm1, %v1947_v31  ;;  %v1629_v32 = vmul.f32 %v2906_v1, %v3255_v30 }
 0x2cd   : > { %v1885_v41 = vadd.f32 %v1834_v44, %v1761_v33  ;;  %v1325_v50 = vadd.f32 %v1286_v15, %v1200_v57  ;;  %v1568_v35 = vrot.slane %v1510_v18, 2  ;;  %v1670_v13 = vmul.f32 %v2952_v25, %v3255_v30 }
 0x2ce   : > { %v1446_v8 = vsel %vm1133_vm4, %v1444_v48, %v3876_v39  ;;  %v3879_v47 = vrot.slane %v3263_v14, 2  ;;  %v3278_v51 = vmul.f32 %v2952_v25, %v3266_v2  ;;  %v1794_v31 = vmul.f32 %v2939_v17, %v3255_v30 }
 0x2cf   : > { %v1908_v44 = vadd.f32 %v3060_v4, %v1885_v41  ;;  %v1361_v21 = vadd.f32 %v1345_v19, %v1325_v50  ;;  %v3285_v33 = vmul.f32 %v2939_v17, %v3266_v2  ;;  %v1728_v18 = vrot.slane %v1670_v13, 1 }
 0x2d0   : > { %v1570_v57 = vsel %vm1258_vm5, %v1568_v35, %v3879_v47  ;;  %v3880_v15 = vrot.slane %v3278_v51, 1  ;;  %v1052_v48 = vmul.f32 %v2894_v58, %v2910_v3  ;;  %v1852_v19 = vrot.slane %v1794_v31, 2 }
 0x2d1   : > { %v1924_v39 = vmax.f32 %v1908_v44, 0.0  ;;  %v1485_v41 = vadd.f32 %v1446_v8, %v1361_v21  ;;  %v3881_v50 = vrot.slane %v3285_v33, 2  ;;  %v1090_v7 = vmul.f32 %v2896_v59, %v3068_v29  ;;  %v3308_v21 = vld [vmem:[#allocation2 + $0x58] sm:$0x3] }
 0x2d2   : > { %v1730_v20 = vsel %vm1133_vm4, %v1728_v18, %v3880_v15  ;;  %v1215_v35 = vmul.f32 %v2898_v60, %v3068_v29  ;;  %v1338_v13 = vmul.f32 %v2900_v62, %v2956_v27  ;;  %v1376_v44 = vmul.f32 %v2902_v63, %v3080_v43 }
 0x2d3   : > { %v1940_v47 = vmin.f32 %v1924_v39, 6.0  ;;  %v1609_v3 = vadd.f32 %v1570_v57, %v1485_v41  ;;  %v1854_v8 = vsel %vm1258_vm5, %v1852_v19, %v3881_v50  ;;  %v1142_v31 = vrot.slane %v1090_v7, 1 }
 0x2d4   : > { %v1267_v18 = vrot.slane %v1215_v35, 2  ;;  %v1500_v15 = vmul.f32 %v2904_v0, %v3080_v43  ;;  %v1622_v29 = vmul.f32 %v2906_v1, %v3195_v52  ;;  %v1427_v57 = vrot.slane %v1376_v44, 1 }
 0x2d5   : > { %2495 = vmatprep.mubr.msk.f32.mxu0 %vm501_vm1, %v1940_v47  ;;  %v1645_v39 = vadd.f32 %v1629_v32, %v1609_v3  ;;  %v1660_v41 = vmul.f32 %v2952_v25, %v3308_v21  ;;  %v1784_v19 = vmul.f32 %v2939_v17, %v3308_v21  ;;  %v1143_v7 = vsel %vm1133_vm4, %v1140_v28, %v1142_v31 }
 0x2d6   : > { %v1268_v35 = vsel %vm1258_vm5, %v1265_v11, %v1267_v18  ;;  %v1551_v50 = vrot.slane %v1500_v15, 2  ;;  %v1060_v47 = vmul.f32 %v2894_v58, %v3008_v56  ;;  %v1193_v3 = vadd.f32 %v1143_v7, %v1052_v48 }
 0x2d7   : > { %v1769_v32 = vadd.f32 %v1730_v20, %v1645_v39  ;;  %v1428_v44 = vsel %vm1133_vm4, %v1425_v49, %v1427_v57  ;;  %v1711_v45 = vrot.slane %v1660_v41, 1  ;;  %v1835_v28 = vrot.slane %v1784_v19, 2  ;;  %v3348_v39 = vld [vmem:[#allocation2 + $0xb8] sm:$0x3] }
 0x2d8   : > { %v1552_v6 = vsel %vm1258_vm5, %v1549_v9, %v1551_v50  ;;  %v1102_v61 = vmul.f32 %v2896_v59, %v3109_v22  ;;  %v1227_v11 = vmul.f32 %v2898_v60, %v3109_v22  ;;  %v1318_v31 = vadd.f32 %v1268_v35, %v1193_v3 }
 0x2d9   : > { %v1893_v15 = vadd.f32 %v1854_v8, %v1769_v32  ;;  %v1712_v53 = vsel %vm1133_vm4, %v1709_v40, %v1711_v45  ;;  %v1346_v49 = vmul.f32 %v2900_v62, %v3031_v23  ;;  %v3896_v38 = vrot.slane %v3214_v42, 2 }
 0x2da   : > { %v1162_v20 = vrot.slane %v1102_v61, 1  ;;  %v1287_v48 = vrot.slane %v1227_v11, 2  ;;  %v1388_v50 = vmul.f32 %v2902_v63, %v3128_v10  ;;  %v1354_v8 = vadd.f32 %v1338_v13, %v1318_v31 }
 0x2db   : > { %v1836_v9 = vsel %vm1258_vm5, %v3896_v38, %v1835_v28  ;;  %v1916_v18 = vadd.f32 %v3060_v4, %v1893_v15  ;;  %v1512_v55 = vmul.f32 %v2904_v0, %v3128_v10  ;;  %v1630_v40 = vmul.f32 %v2906_v1, %v3266_v2 }
 0x2dc   : > { %v3897_v42 = vrot.slane %v3225_v24, 1  ;;  %v3898_v57 = vrot.slane %v3239_v54, 2  ;;  %v1447_v19 = vrot.slane %v1388_v50, 1  ;;  %v1672_v13 = vmul.f32 %v2952_v25, %v3348_v39 }
 0x2dd   : > { %v1932_v7 = vmax.f32 %v1916_v18, 0.0  ;;  %v1478_v35 = vadd.f32 %v1428_v44, %v1354_v8  ;;  %v1571_v3 = vrot.slane %v1512_v55, 2  ;;  %v3899_v28 = vrot.slane %v3251_v12, 1 }
 0x2de   : > { %v1163_v45 = vsel %vm1133_vm4, %v3897_v42, %v1162_v20  ;;  %v1288_v41 = vsel %vm1258_vm5, %v3898_v57, %v1287_v48  ;;  %v1731_v11 = vrot.slane %v1672_v13, 1  ;;  %v1796_v24 = vmul.f32 %v2939_v17, %v3348_v39 }
 0x2df   : > { %v1201_v32 = vadd.f32 %v1163_v45, %v1060_v47  ;;  %v1448_v61 = vsel %vm1133_vm4, %v3899_v28, %v1447_v19  ;;  %v1053_v54 = vmul.f32 %v2894_v58, %v2934_v16  ;;  %v1948_v15 = vmin.f32 %v1932_v7, 6.0 }
 0x2e0   : > { %v1602_v31 = vadd.f32 %v1552_v6, %v1478_v35  ;;  %v3900_v20 = vrot.slane %v3263_v14, 2  ;;  %v3901_v47 = vrot.slane %v3278_v51, 1  ;;  %v1855_v48 = vrot.slane %v1796_v24, 2 }
 0x2e1   : > { %v1326_v38 = vadd.f32 %v1288_v41, %v1201_v32  ;;  %v1091_v50 = vmul.f32 %v2896_v59, %v2934_v16  ;;  %v3379_v18 = vmul.f32 %v2896_v59, %v2956_v27  ;;  %2507 = vmatprep.mubr.msk.f32.mxu1 %vm501_vm1, %v1948_v15  ;;  %v1216_v14 = vmul.f32 %v2898_v60, %v2934_v16 }
 0x2e2   : > { %v1572_v44 = vsel %vm1258_vm5, %v3900_v20, %v1571_v3  ;;  %v1732_v12 = vsel %vm1133_vm4, %v3901_v47, %v1731_v11  ;;  %v1638_v6 = vadd.f32 %v1622_v29, %v1602_v31  ;;  %v3386_v51 = vmul.f32 %v2898_v60, %v2956_v27 }
 0x2e3   : > { %v1362_v8 = vadd.f32 %v1346_v49, %v1326_v38  ;;  %v3902_v55 = vrot.slane %v3285_v33, 2  ;;  %v1144_v45 = vrot.slane %v1091_v50, 1  ;;  %v1145_v57 = vrot.slane %v3379_v18, 1 }
 0x2e4   : > { %v1339_v41 = vmul.f32 %v2900_v62, %v3183_v34  ;;  %v1762_v19 = vadd.f32 %v1712_v53, %v1638_v6  ;;  %v1269_v49 = vrot.slane %v1216_v14, 2  ;;  %v1270_v13 = vrot.slane %v3386_v51, 2 }
 0x2e5   : > { %v1856_v42 = vsel %vm1258_vm5, %v3902_v55, %v1855_v48  ;;  %v1486_v29 = vadd.f32 %v1448_v61, %v1362_v8  ;;  %v1146_v16 = vsel %vm1133_vm4, %v1144_v45, %v1145_v57  ;;  %v1377_v33 = vmul.f32 %v2902_v63, %v3183_v34 }
 0x2e6   : > { %v3402_v7 = vmul.f32 %v2902_v63, %v3195_v52  ;;  %v1501_v35 = vmul.f32 %v2904_v0, %v3183_v34  ;;  %v1886_v32 = vadd.f32 %v1836_v9, %v1762_v19  ;;  %v1194_v3 = vadd.f32 %v1146_v16, %v1053_v54 }
 0x2e7   : > { %v1610_v53 = vadd.f32 %v1572_v44, %v1486_v29  ;;  %v1271_v28 = vsel %vm1258_vm5, %v1269_v49, %v1270_v13  ;;  %v1429_v61 = vrot.slane %v1377_v33, 1  ;;  %v3412_v24 = vmul.f32 %v2904_v0, %v3195_v52 }
 0x2e8   : > { %v1430_v11 = vrot.slane %v3402_v7, 1  ;;  %v1553_v15 = vrot.slane %v1501_v35, 2  ;;  %v1909_v31 = vadd.f32 %v3060_v4, %v1886_v32  ;;  %v1319_v20 = vadd.f32 %v1271_v28, %v1194_v3 }
 0x2e9   : > { %v1646_v38 = vadd.f32 %v1630_v40, %v1610_v53  ;;  %v1623_v9 = vmul.f32 %v2906_v1, %v2954_v26  ;;  %v1554_v44 = vrot.slane %v3412_v24, 2  ;;  %v1661_v47 = vmul.f32 %v2952_v25, %v2954_v26 }
 0x2ea   : > { %v1431_v54 = vsel %vm1133_vm4, %v1429_v61, %v1430_v11  ;;  %v3425_v48 = vmul.f32 %v2952_v25, %v2977_v36  ;;  %v1925_v50 = vmax.f32 %v1909_v31, 0.0  ;;  %v1355_v40 = vadd.f32 %v1339_v41, %v1319_v20 }
 0x2eb   : > { %v1770_v6 = vadd.f32 %v1732_v12, %v1646_v38  ;;  %v1785_v8 = vmul.f32 %v2939_v17, %v2954_v26  ;;  %v1555_v14 = vsel %vm1258_vm5, %v1553_v15, %v1554_v44  ;;  %v1713_v55 = vrot.slane %v1661_v47, 1 }
 0x2ec   : > { %v1714_v45 = vrot.slane %v3425_v48, 1  ;;  %v3435_v19 = vmul.f32 %v2939_v17, %v2977_v36  ;;  %v1941_v29 = vmin.f32 %v1925_v50, 6.0  ;;  %v1479_v16 = vadd.f32 %v1431_v54, %v1355_v40 }
 0x2ed   : > { %v1894_v49 = vadd.f32 %v1856_v42, %v1770_v6  ;;  %v1837_v33 = vrot.slane %v1785_v8, 2  ;;  %v1061_v35 = vmul.f32 %v2894_v58, %v3013_v5  ;;  %v1103_v32 = vmul.f32 %v2896_v59, %v3013_v5 }
 0x2ee   : > { %v1715_v12 = vsel %vm1133_vm4, %v1713_v55, %v1714_v45  ;;  %v3889_v41 = vrot.slane %v3435_v19, 2  ;;  %2496 = vmatmul.mubr.msk.f32.gmra.mxu0 %vm501_vm1, %v1941_v29  ;;  %v1603_v3 = vadd.f32 %v1555_v14, %v1479_v16  ;;  %v3449_v42 = vmul.f32 %v2896_v59, %v3031_v23 }
 0x2ef   : > { %v1917_v53 = vadd.f32 %v3060_v4, %v1894_v49  ;;  %v1228_v28 = vmul.f32 %v2898_v60, %v3013_v5  ;;  %v1164_v15 = vrot.slane %v1103_v32, 1  ;;  %v3458_v31 = vmul.f32 %v2898_v60, %v3031_v23  ;;  %v3479_v49 = vld [vmem:[#allocation2 + $0xc0] sm:$0xff] }
 0x2f0   : > { %v1839_v61 = vsel %vm1258_vm5, %v1837_v33, %v3889_v41  ;;  %v1347_v38 = vmul.f32 %v2900_v62, %v3255_v30  ;;  %v1639_v54 = vadd.f32 %v1623_v9, %v1603_v3  ;;  %v3886_v47 = vrot.slane %v3449_v42, 1  ;;  %v3486_v3 = vld [vmem:[#allocation2 + $0xc8] sm:$0xff] }
 0x2f1   : > { %v1933_v20 = vmax.f32 %v1917_v53, 0.0  ;;  %v1289_v50 = vrot.slane %v1228_v28, 2  ;;  %v3884_v6 = vrot.slane %v3458_v31, 2  ;;  %v1389_v5 = vmul.f32 %v2902_v63, %v3255_v30 }
 0x2f2   : > { %v3468_v40 = vmul.f32 %v2902_v63, %v3266_v2  ;;  %v1513_v8 = vmul.f32 %v2904_v0, %v3255_v30  ;;  %v1763_v55 = vadd.f32 %v1715_v12, %v1639_v54  ;;  %v1166_v9 = vsel %vm1133_vm4, %v1164_v15, %v3886_v47 }
 0x2f3   : > { %v1949_v14 = vmin.f32 %v1933_v20, 6.0  ;;  %v3477_v29 = vmul.f32 %v2904_v0, %v3266_v2  ;;  %v1202_v16 = vadd.f32 %v1166_v9, %v1061_v35  ;;  %v1291_v33 = vsel %vm1258_vm5, %v1289_v50, %v3884_v6 }
 0x2f4   : > { %v1449_v32 = vrot.slane %v1389_v5, 1  ;;  %v3883_v53 = vrot.slane %v3468_v40, 1  ;;  %v1887_v12 = vadd.f32 %v1839_v61, %v1763_v55  ;;  %v1573_v28 = vrot.slane %v1513_v8, 2 }
 0x2f5   : > { %2508 = vmatmul.mubr.msk.f32.gmra.mxu1 %vm501_vm1, %v1949_v14  ;;  %v3885_v15 = vrot.slane %v3477_v29, 2  ;;  %v1631_v20 = vmul.f32 %v2906_v1, %v3479_v49  ;;  %v1327_v54 = vadd.f32 %v1291_v33, %v1202_v16  ;;  %v1673_v50 = vmul.f32 %v2952_v25, %v3479_v49 }
 0x2f6   : > { %v1451_v35 = vsel %vm1133_vm4, %v1449_v32, %v3883_v53  ;;  %v3498_v5 = vmul.f32 %v2952_v25, %v3486_v3  ;;  %v1910_v61 = vadd.f32 %v3060_v4, %v1887_v12  ;;  %v1797_v14 = vmul.f32 %v2939_v17, %v3479_v49 }
 0x2f7   : > { %v1575_v8 = vsel %vm1258_vm5, %v1573_v28, %v3885_v15  ;;  %v3508_v55 = vmul.f32 %v2939_v17, %v3486_v3  ;;  %v1363_v9 = vadd.f32 %v1347_v38, %v1327_v54  ;;  %v1733_v16 = vrot.slane %v1673_v50, 1 }
 0x2f8   : > { %v3887_v33 = vrot.slane %v3498_v5, 1  ;;  %v1054_v32 = vmul.f32 %v2894_v58, %v2956_v27  ;;  %v1926_v53 = vmax.f32 %v1910_v61, 0.0  ;;  %v1857_v12 = vrot.slane %v1797_v14, 2 }
 0x2f9   : > { %v3888_v6 = vrot.slane %v3508_v55, 2  ;;  %v1093_v28 = vmul.f32 %v2896_v59, %v3080_v43  ;;  %v1487_v15 = vadd.f32 %v1451_v35, %v1363_v9  ;;  %v1218_v38 = vmul.f32 %v2898_v60, %v3080_v43 }
 0x2fa   : > { %v1735_v47 = vsel %vm1133_vm4, %v1733_v16, %v3887_v33  ;;  %v1340_v54 = vmul.f32 %v2900_v62, %v3195_v52  ;;  %v1942_v50 = vmin.f32 %v1926_v53, 6.0  ;;  %v1379_v14 = vmul.f32 %v2902_v63, %v3308_v21 }
 0x2fb   : > { %v1859_v27 = vsel %vm1258_vm5, %v1857_v12, %v3888_v6  ;;  %v1147_v61 = vrot.slane %v1093_v28, 1  ;;  %v1611_v35 = vadd.f32 %v1575_v8, %v1487_v15  ;;  %v1272_v9 = vrot.slane %v1218_v38, 2 }
 0x2fc   : > { %v1503_v16 = vmul.f32 %v2904_v0, %v3308_v21  ;;  %v1624_v43 = vmul.f32 %v2906_v1, %v2977_v36  ;;  %2498 = vmatprep.mubr.msk.f32.mxu0 %vm501_vm1, %v1942_v50  ;;  %v1432_v33 = vrot.slane %v1379_v14, 1  ;;  %v1663_v12 = vmul.f32 %v2952_v25, %v3094_v37 }
 0x2fd   : > { %v1148_v53 = vsel %vm1133_vm4, %v1145_v57, %v1147_v61  ;;  %v1787_v15 = vmul.f32 %v2939_v17, %v3094_v37  ;;  %v1647_v8 = vadd.f32 %v1631_v20, %v1611_v35  ;;  %v1273_v38 = vsel %vm1258_vm5, %v1270_v13, %v1272_v9 }
 0x2fe   : > { %v1195_v28 = vadd.f32 %v1148_v53, %v1054_v32  ;;  %v1556_v6 = vrot.slane %v1503_v16, 2  ;;  %v1433_v18 = vsel %vm1133_vm4, %v1430_v11, %v1432_v33  ;;  %v1716_v50 = vrot.slane %v1663_v12, 1 }
 0x2ff   : > { %v1840_v57 = vrot.slane %v1787_v15, 2  ;;  %v1062_v61 = vmul.f32 %v2894_v58, %v3031_v23  ;;  %v1771_v14 = vadd.f32 %v1735_v47, %v1647_v8  ;;  %v1105_v51 = vmul.f32 %v2896_v59, %v3128_v10 }
 0x300   : > { %v1320_v41 = vadd.f32 %v1273_v38, %v1195_v28  ;;  %v1557_v20 = vsel %vm1258_vm5, %v1554_v44, %v1556_v6  ;;  %v1717_v13 = vsel %vm1133_vm4, %v1714_v45, %v1716_v50  ;;  %v3903_v7 = vrot.slane %v3435_v19, 2  ;;  %v3563_v44 = vld [vmem:[#allocation2 + $0xd0] sm:$0x3] }
 0x301   : > { %v1230_v23 = vmul.f32 %v2898_v60, %v3128_v10  ;;  %v1348_v47 = vmul.f32 %v2900_v62, %v3266_v2  ;;  %v1895_v24 = vadd.f32 %v1859_v27, %v1771_v14  ;;  %v1167_v6 = vrot.slane %v1105_v51, 1 }
 0x302   : > { %v1841_v11 = vsel %vm1258_vm5, %v3903_v7, %v1840_v57  ;;  %v1356_v33 = vadd.f32 %v1340_v54, %v1320_v41  ;;  %v1391_v48 = vmul.f32 %v2902_v63, %v3348_v39  ;;  %v1515_v45 = vmul.f32 %v2904_v0, %v3348_v39 }
 0x303   : > { %v1292_v32 = vrot.slane %v1230_v23, 2  ;;  %v1632_v19 = vmul.f32 %v2906_v1, %v3486_v3  ;;  %v1675_v10 = vmul.f32 %v2952_v25, %v3563_v44  ;;  %v1918_v35 = vadd.f32 %v3060_v4, %v1895_v24 }
 0x304   : > { %v1480_v27 = vadd.f32 %v1433_v18, %v1356_v33  ;;  %v3904_v41 = vrot.slane %v3449_v42, 1  ;;  %v1452_v9 = vrot.slane %v1391_v48, 1  ;;  %v3905_v53 = vrot.slane %v3458_v31, 2 }
 0x305   : > { %v1576_v15 = vrot.slane %v1515_v45, 2  ;;  %v1736_v8 = vrot.slane %v1675_v10, 1  ;;  %v1934_v28 = vmax.f32 %v1918_v35, 0.0  ;;  %v3906_v50 = vrot.slane %v3468_v40, 1 }
 0x306   : > { %v1168_v54 = vsel %vm1133_vm4, %v3904_v41, %v1167_v6  ;;  %v1293_v12 = vsel %vm1258_vm5, %v3905_v53, %v1292_v32  ;;  %v1604_v38 = vadd.f32 %v1557_v20, %v1480_v27  ;;  %v1799_v18 = vmul.f32 %v2939_v17, %v3563_v44 }
 0x307   : > { %v1203_v16 = vadd.f32 %v1168_v54, %v1062_v61  ;;  %v1453_v57 = vsel %vm1133_vm4, %v3906_v50, %v1452_v9  ;;  %v3907_v14 = vrot.slane %v3477_v29, 2  ;;  %v3908_v31 = vrot.slane %v3498_v5, 1 }
 0x308   : > { %v1055_v7 = vmul.f32 %v2894_v58, %v3183_v34  ;;  %v1950_v20 = vmin.f32 %v1934_v28, 6.0  ;;  %v1640_v23 = vadd.f32 %v1624_v43, %v1604_v38  ;;  %v1860_v40 = vrot.slane %v1799_v18, 2 }
 0x309   : > { %v1328_v42 = vadd.f32 %v1293_v12, %v1203_v16  ;;  %v1577_v61 = vsel %vm1258_vm5, %v3907_v14, %v1576_v15  ;;  %v1737_v51 = vsel %vm1133_vm4, %v3908_v31, %v1736_v8  ;;  %v1094_v24 = vmul.f32 %v2896_v59, %v3183_v34 }
 0x30a   : > { %v3597_v6 = vmul.f32 %v2896_v59, %v3195_v52  ;;  %v1219_v29 = vmul.f32 %v2898_v60, %v3183_v34  ;;  %v3603_v5 = vmul.f32 %v2898_v60, %v3195_v52  ;;  %2510 = vmatprep.mubr.msk.f32.mxu1 %vm501_vm1, %v1950_v20  ;;  %v1764_v48 = vadd.f32 %v1717_v13, %v1640_v23 }
 0x30b   : > { %v1364_v33 = vadd.f32 %v1348_v47, %v1328_v42  ;;  %v3909_v43 = vrot.slane %v3508_v55, 2  ;;  %v1149_v45 = vrot.slane %v1094_v24, 1  ;;  %v1341_v47 = vmul.f32 %v2900_v62, %v2954_v26 }
 0x30c   : > { %v1150_v35 = vrot.slane %v3597_v6, 1  ;;  %v1274_v27 = vrot.slane %v1219_v29, 2  ;;  %v1275_v34 = vrot.slane %v3603_v5, 2  ;;  %v1888_v41 = vadd.f32 %v1841_v11, %v1764_v48 }
 0x30d   : > { %v1861_v32 = vsel %vm1258_vm5, %v3909_v43, %v1860_v40  ;;  %v1488_v10 = vadd.f32 %v1453_v57, %v1364_v33  ;;  %v1380_v54 = vmul.f32 %v2902_v63, %v2954_v26  ;;  %v3617_v13 = vmul.f32 %v2902_v63, %v2977_v36 }
 0x30e   : > { %v1504_v55 = vmul.f32 %v2904_v0, %v2954_v26  ;;  %v1151_v16 = vsel %vm1133_vm4, %v1149_v45, %v1150_v35  ;;  %v1276_v53 = vsel %vm1258_vm5, %v1274_v27, %v1275_v34  ;;  %v3629_v11 = vmul.f32 %v2904_v0, %v2977_v36 }
 0x30f   : > { %v1612_v9 = vadd.f32 %v1577_v61, %v1488_v10  ;;  %v1911_v12 = vadd.f32 %v3060_v4, %v1888_v41  ;;  %v1196_v15 = vadd.f32 %v1151_v16, %v1055_v7  ;;  %v1434_v8 = vrot.slane %v1380_v54, 1 }
 0x310   : > { %v1435_v28 = vrot.slane %v3617_v13, 1  ;;  %v1558_v38 = vrot.slane %v1504_v55, 2  ;;  %v1559_v50 = vrot.slane %v3629_v11, 2  ;;  %v1625_v57 = vmul.f32 %v2906_v1, %v2988_v46 }
 0x311   : > { %v1648_v26 = vadd.f32 %v1632_v19, %v1612_v9  ;;  %v1927_v18 = vmax.f32 %v1911_v12, 0.0  ;;  %v1321_v42 = vadd.f32 %v1276_v53, %v1196_v15  ;;  %v1664_v14 = vmul.f32 %v2952_v25, %v2988_v46  ;;  %v1040_v15 = vld [vmem:[#allocation2 + $0xd8] sm:$0xff] }
 0x312   : > { %v1436_v36 = vsel %vm1133_vm4, %v1434_v8, %v1435_v28  ;;  %v1560_v19 = vsel %vm1258_vm5, %v1558_v38, %v1559_v50  ;;  %v3646_v31 = vmul.f32 %v2952_v25, %v3008_v56  ;;  %v1788_v7 = vmul.f32 %v2939_v17, %v2988_v46 }
 0x313   : > { %v1772_v61 = vadd.f32 %v1737_v51, %v1648_v26  ;;  %v1943_v20 = vmin.f32 %v1927_v18, 6.0  ;;  %v1357_v23 = vadd.f32 %v1341_v47, %v1321_v42  ;;  %v1718_v40 = vrot.slane %v1664_v14, 1  ;;  %v3691_v42 = vld [vmem:[#allocation2 + $0xe0] sm:$0xff] }
 0x314   : > { %v3652_v24 = vmul.f32 %v2939_v17, %v3008_v56  ;;  %v1719_v51 = vrot.slane %v3646_v31, 1  ;;  %v1842_v29 = vrot.slane %v1788_v7, 2  ;;  %v1063_v48 = vmul.f32 %v2894_v58, %v3255_v30 }
 0x315   : > { %v1896_v33 = vadd.f32 %v1861_v32, %v1772_v61  ;;  %2499 = vmatmul.mubr.msk.f32.gmra.mxu0 %vm501_vm1, %v1943_v20  ;;  %v1481_v43 = vadd.f32 %v1436_v36, %v1357_v23  ;;  %v1106_v46 = vmul.f32 %v2896_v59, %v3255_v30  ;;  %v3663_v47 = vmul.f32 %v2896_v59, %v3266_v2 }
 0x316   : > { %v1843_v45 = vrot.slane %v3652_v24, 2  ;;  %v1720_v56 = vsel %vm1133_vm4, %v1718_v40, %v1719_v51  ;;  %v1231_v32 = vmul.f32 %v2898_v60, %v3255_v30  ;;  %v3673_v10 = vmul.f32 %v2898_v60, %v3266_v2 }
 0x317   : > { %v1919_v17 = vadd.f32 %v3060_v4, %v1896_v33  ;;  %v1605_v27 = vadd.f32 %v1560_v19, %v1481_v43  ;;  %v1169_v54 = vrot.slane %v1106_v46, 1  ;;  %v1170_v55 = vrot.slane %v3663_v47, 1 }
 0x318   : > { %v1844_v41 = vsel %vm1258_vm5, %v1842_v29, %v1843_v45  ;;  %v1294_v16 = vrot.slane %v1231_v32, 2  ;;  %v1295_v53 = vrot.slane %v3673_v10, 2  ;;  %v1349_v12 = vmul.f32 %v2900_v62, %v3479_v49 }
 0x319   : > { %v1935_v9 = vmax.f32 %v1919_v17, 0.0  ;;  %v1641_v30 = vadd.f32 %v1625_v57, %v1605_v27  ;;  %v1171_v8 = vsel %vm1133_vm4, %v1169_v54, %v1170_v55  ;;  %v1392_v26 = vmul.f32 %v2902_v63, %v3479_v49  ;;  %v3716_v17 = vld [vmem:[%s3866_s5 + $0x8] ss:$0 sm:$0xff] }
 0x31a   : > { %v3689_v38 = vmul.f32 %v2902_v63, %v3486_v3  ;;  %v1204_v36 = vadd.f32 %v1171_v8, %v1063_v48  ;;  %v1296_v57 = vsel %vm1258_vm5, %v1294_v16, %v1295_v53  ;;  %v1516_v14 = vmul.f32 %v2904_v0, %v3479_v49 }
 0x31b   : > { %v1951_v18 = vmin.f32 %v1935_v9, 6.0  ;;  %v1765_v61 = vadd.f32 %v1720_v56, %v1641_v30  ;;  %v1454_v19 = vrot.slane %v1392_v26, 1  ;;  %v3701_v20 = vmul.f32 %v2904_v0, %v3486_v3 }
 0x31c   : > { %v1455_v7 = vrot.slane %v3689_v38, 1  ;;  %v1329_v23 = vadd.f32 %v1296_v57, %v1204_v36  ;;  %v1578_v40 = vrot.slane %v1516_v14, 2  ;;  %v1676_v33 = vmul.f32 %v2952_v25, %v1040_v15 }
 0x31d   : > { %2511 = vmatmul.mubr.msk.f32.gmra.mxu1 %vm501_vm1, %v1951_v18  ;;  %v1889_v29 = vadd.f32 %v1844_v41, %v1765_v61  ;;  %v1579_v49 = vrot.slane %v3701_v20, 2  ;;  %v3711_v43 = vmul.f32 %v2952_v25, %v3691_v42  ;;  %v1800_v56 = vmul.f32 %v3716_v17, %v1040_v15 }
 0x31e   : > { %v1456_v48 = vsel %vm1133_vm4, %v1454_v19, %v1455_v7  ;;  %v1365_v46 = vadd.f32 %v1349_v12, %v1329_v23  ;;  %v3721_v32 = vmul.f32 %v3716_v17, %v3691_v42  ;;  %v1738_v54 = vrot.slane %v1676_v33, 1 }
 0x31f   : > { %v1912_v27 = vadd.f32 %v3060_v4, %v1889_v29  ;;  %v1580_v41 = vsel %vm1258_vm5, %v1578_v40, %v1579_v49  ;;  %v1739_v9 = vrot.slane %v3711_v43, 1  ;;  %v1633_v12 = vmul.f32 %v2906_v1, %v1040_v15 }
 0x320   : > { %v1489_v16 = vadd.f32 %v1456_v48, %v1365_v46  ;;  %v1056_v30 = vmul.f32 %v2894_v58, %v3195_v52  ;;  %v1096_v8 = vmul.f32 %v2896_v59, %v3308_v21  ;;  %v1862_v18 = vrot.slane %v1800_v56, 2 }
 0x321   : > { %v1928_v26 = vmax.f32 %v1912_v27, 0.0  ;;  %v1863_v4 = vrot.slane %v3721_v32, 2  ;;  %v1221_v36 = vmul.f32 %v2898_v60, %v3308_v21  ;;  %v1382_v61 = vmul.f32 %v2902_v63, %v3094_v37  ;;  %v2566_v21 = vld [vmem:[#allocation2 + $0x68] sm:$0xff] }
 0x322   : > { %v1613_v57 = vadd.f32 %v1580_v41, %v1489_v16  ;;  %v1152_v14 = vrot.slane %v1096_v8, 1  ;;  %v1740_v52 = vsel %vm1133_vm4, %v1738_v54, %v1739_v9  ;;  %v1506_v23 = vmul.f32 %v2904_v0, %v3094_v37  ;;  %v2567_v54 = vld [vmem:[#allocation2 + $0x80] sm:$0xff] }
 0x323   : > { %v1944_v19 = vmin.f32 %v1928_v26, 6.0  ;;  %v1277_v15 = vrot.slane %v1221_v36, 2  ;;  %v1342_v29 = vmul.f32 %v2566_v21, %v2900_v62  ;;  %v1437_v48 = vrot.slane %v1382_v61, 1 }
 0x324   : > { %v1649_v40 = vadd.f32 %v1633_v12, %v1613_v57  ;;  %v1153_v33 = vsel %vm1133_vm4, %v1150_v35, %v1152_v14  ;;  %v1864_v46 = vsel %vm1258_vm5, %v1862_v18, %v1863_v4  ;;  %v1666_v6 = vmul.f32 %v2952_v25, %v3109_v22 }
 0x325   : > { %2501 = vmatprep.mubr.msk.f32.mxu0 %vm501_vm1, %v1944_v19  ;;  %v1197_v56 = vadd.f32 %v1153_v33, %v1056_v30  ;;  %v1278_v37 = vsel %vm1258_vm5, %v1275_v34, %v1277_v15  ;;  %v1561_v35 = vrot.slane %v1506_v23, 2  ;;  %v1626_v16 = vmul.f32 %v2567_v54, %v2906_v1 }
 0x326   : > { %v1773_v27 = vadd.f32 %v1740_v52, %v1649_v40  ;;  %v1790_v12 = vmul.f32 %v3716_v17, %v3109_v22  ;;  %v1108_v8 = vmul.f32 %v2896_v59, %v3348_v39  ;;  %v1438_v5 = vsel %vm1133_vm4, %v1435_v28, %v1437_v48  ;;  %v2568_v59 = vld [vmem:[%s3867_s6] ss:$0 sm:$0xff]  ;;  %v1042_v28 = vld [vmem:[#allocation2 + $0xe8] sm:$0x3] }
 0x327   : > { %v1322_v41 = vadd.f32 %v1278_v37, %v1197_v56  ;;  %v1064_v34 = vmul.f32 %v2894_v58, %v3266_v2  ;;  %v1233_v26 = vmul.f32 %v2898_v60, %v3348_v39  ;;  %v1721_v36 = vrot.slane %v1666_v6, 1 }
 0x328   : > { %v1897_v30 = vadd.f32 %v1864_v46, %v1773_v27  ;;  %v1172_v57 = vrot.slane %v1108_v8, 1  ;;  %v1394_v22 = vmul.f32 %v2902_v63, %v3563_v44  ;;  %v1562_v13 = vsel %vm1258_vm5, %v1559_v50, %v1561_v35 }
 0x329   : > { %v1358_v18 = vadd.f32 %v1342_v29, %v1322_v41  ;;  %v1297_v58 = vrot.slane %v1233_v26, 2  ;;  %v1518_v60 = vmul.f32 %v2904_v0, %v3563_v44  ;;  %v1845_v39 = vrot.slane %v1790_v12, 2 }
 0x32a   : > { %v1920_v14 = vadd.f32 %v2568_v59, %v1897_v30  ;;  %v1173_v63 = vsel %vm1133_vm4, %v1170_v55, %v1172_v57  ;;  %v1457_v61 = vrot.slane %v1394_v22, 1  ;;  %v1350_v50 = vmul.f32 %v2900_v62, %v3486_v3 }
 0x32b   : > { %v1482_v2 = vadd.f32 %v1438_v5, %v1358_v18  ;;  %v1205_v52 = vadd.f32 %v1173_v63, %v1064_v34  ;;  %v1298_v11 = vsel %vm1258_vm5, %v1295_v53, %v1297_v58  ;;  %v1581_v23 = vrot.slane %v1518_v60, 2 }
 0x32c   : > { %v1936_v19 = vmax.f32 %v1920_v14, 0.0  ;;  %v1678_v0 = vmul.f32 %v2952_v25, %v1042_v28  ;;  %v1722_v47 = vsel %vm1133_vm4, %v1719_v51, %v1721_v36  ;;  %v1458_v10 = vsel %vm1133_vm4, %v1455_v7, %v1457_v61 }
 0x32d   : > { %v1606_v15 = vadd.f32 %v1562_v13, %v1482_v2  ;;  %v1330_v55 = vadd.f32 %v1298_v11, %v1205_v52  ;;  %v1802_v53 = vmul.f32 %v3716_v17, %v1042_v28  ;;  %v1846_v62 = vsel %vm1258_vm5, %v1843_v45, %v1845_v39 }
 0x32e   : > { %v1952_v44 = vmin.f32 %v1936_v19, 6.0  ;;  %v1582_v31 = vsel %vm1258_vm5, %v1579_v49, %v1581_v23  ;;  %v1741_v51 = vrot.slane %v1678_v0, 1  ;;  %v1634_v38 = vmul.f32 %v2906_v1, %v3691_v42 }
 0x32f   : > { %v1642_v40 = vadd.f32 %v1626_v16, %v1606_v15  ;;  %v1366_v25 = vadd.f32 %v1350_v50, %v1330_v55  ;;  %v1865_v21 = vrot.slane %v1802_v53, 2 }
 0x330   : > { %2513 = vmatprep.mubr.msk.f32.mxu1 %vm501_vm1, %v1952_v44  ;;  %v1742_v24 = vsel %vm1133_vm4, %v1739_v9, %v1741_v51  ;;  %v2381_v9 = vld [vmem:[%s3869_s8] ss:$0 sm:$0xff] }
 0x331   : > { %v1766_v3 = vadd.f32 %v1722_v47, %v1642_v40  ;;  %v1490_v33 = vadd.f32 %v1458_v10, %v1366_v25  ;;  %v1866_v20 = vsel %vm1258_vm5, %v1863_v4, %v1865_v21 }
 0x333   : > { %v1890_v7 = vadd.f32 %v1846_v62, %v1766_v3  ;;  %v1614_v17 = vadd.f32 %v1582_v31, %v1490_v33 }
 0x335   : > { %v1913_v29 = vadd.f32 %v2568_v59, %v1890_v7  ;;  %v1650_v45 = vadd.f32 %v1634_v38, %v1614_v17 }
 0x337   : > { %v1929_v48 = vmax.f32 %v1913_v29, 0.0  ;;  %v1774_v49 = vadd.f32 %v1742_v24, %v1650_v45 }
 0x339   : > { %v1945_v46 = vmin.f32 %v1929_v48, 6.0  ;;  %v1898_v56 = vadd.f32 %v1866_v20, %v1774_v49 }
 0x33b   : > { %2502 = vmatmul.mubr.msk.f32.gmra.mxu0 %vm501_vm1, %v1945_v46  ;;  %v1921_v1 = vadd.f32 %v2568_v59, %v1898_v56 }
 0x33d   : > { %v1937_v42 = vmax.f32 %v1921_v1, 0.0 }
 0x33f   : > { %v1953_v43 = vmin.f32 %v1937_v42, 6.0 }
 0x341   : > { %2514 = vmatmul.mubr.msk.f32.gmra.mxu1 %vm501_vm1, %v1953_v43 }
 0x385   : > { %v2494_v32 = vpop.f32.mrf.mxu0 }
 0x386   : > { %v2084_v4 = vadd.f32 %v2494_v32, %v2381_v9 }
 0x387   : > { %v2078_v37 = vpop.f32.mrf.mxu0 }
 0x388   : > { %2159 = vst.msk [vmem:[%s2760_s17 + $0x8] sm:$0xff] %vm2157_vm6, %v2084_v4  ;;  %v2079_v6 = vadd.f32 %v2381_v9, %v2078_v37 }
 0x38a   : > { %2158 = vst.msk [vmem:[%s2760_s17] sm:$0xff] %vm2157_vm6, %v2079_v6 }
 0x38c   : > { %v2506_v27 = vpop.f32.mrf.mxu1 }
 0x38d   : > { %v2124_v35 = vadd.f32 %v2506_v27, %v2381_v9 }
 0x38e   : > { %v2118_v41 = vpop.f32.mrf.mxu1 }
 0x38f   : > { %2167 = vst.msk [vmem:[%s2760_s17 + $0x48] sm:$0xff] %vm2157_vm6, %v2124_v35  ;;  %v2119_v54 = vadd.f32 %v2381_v9, %v2118_v41 }
 0x391   : > { %2166 = vst.msk [vmem:[%s2760_s17 + $0x40] sm:$0xff] %vm2157_vm6, %v2119_v54 }
 0x3ae   : > { %v2497_v16 = vpop.f32.mrf.mxu0 }
 0x3af   : > { %v2094_v12 = vadd.f32 %v2497_v16, %v2381_v9 }
 0x3b0   : > { %v2088_v8 = vpop.f32.mrf.mxu0 }
 0x3b1   : > { %2161 = vst.msk [vmem:[%s2760_s17 + $0x18] sm:$0xff] %vm2157_vm6, %v2094_v12  ;;  %v2089_v30 = vadd.f32 %v2381_v9, %v2088_v8 }
 0x3b3   : > { %2160 = vst.msk [vmem:[%s2760_s17 + $0x10] sm:$0xff] %vm2157_vm6, %v2089_v30 }
 0x3b5   : > { %v2509_v5 = vpop.f32.mrf.mxu1 }
 0x3b6   : > { %v2134_v34 = vadd.f32 %v2509_v5, %v2381_v9 }
 0x3b7   : > { %v2128_v26 = vpop.f32.mrf.mxu1 }
 0x3b8   : > { %2169 = vst.msk [vmem:[%s2760_s17 + $0x58] sm:$0xff] %vm2157_vm6, %v2134_v34  ;;  %v2129_v18 = vadd.f32 %v2381_v9, %v2128_v26 }
 0x3ba   : > { %2168 = vst.msk [vmem:[%s2760_s17 + $0x50] sm:$0xff] %vm2157_vm6, %v2129_v18 }
 0x3d5   : > { %v2500_v36 = vpop.f32.mrf.mxu0 }
 0x3d6   : > { %v2104_v57 = vadd.f32 %v2500_v36, %v2381_v9 }
 0x3d7   : > { %v2098_v22 = vpop.f32.mrf.mxu0 }
 0x3d8   : > { %2163 = vst.msk [vmem:[%s2760_s17 + $0x28] sm:$0xff] %vm2157_vm6, %v2104_v57  ;;  %v2099_v59 = vadd.f32 %v2381_v9, %v2098_v22 }
 0x3da   : > { %2162 = vst.msk [vmem:[%s2760_s17 + $0x20] sm:$0xff] %vm2157_vm6, %v2099_v59 }
 0x3dd   : > { %v2512_v14 = vpop.f32.mrf.mxu1 }
 0x3de   : > { %v2144_v13 = vadd.f32 %v2512_v14, %v2381_v9 }
 0x3df   : > { %v2138_v28 = vpop.f32.mrf.mxu1 }
 0x3e0   : > { %2171 = vst.msk [vmem:[%s2760_s17 + $0x68] sm:$0xff] %vm2157_vm6, %v2144_v13  ;;  %v2139_v58 = vadd.f32 %v2381_v9, %v2138_v28 }
 0x3e2   : > { %2170 = vst.msk [vmem:[%s2760_s17 + $0x60] sm:$0xff] %vm2157_vm6, %v2139_v58 }
 0x3fb   : > { %v2503_v60 = vpop.f32.mrf.mxu0 }
 0x3fc   : > { %v2114_v2 = vadd.f32 %v2503_v60, %v2381_v9 }
 0x3fd   : > { %v2108_v39 = vpop.f32.mrf.mxu0 }
 0x3fe   : > { %2165 = vst.msk [vmem:[%s2760_s17 + $0x38] sm:$0xff] %vm2157_vm6, %v2114_v2  ;;  %v2109_v63 = vadd.f32 %v2381_v9, %v2108_v39 }
 0x400   : > { %2164 = vst.msk [vmem:[%s2760_s17 + $0x30] sm:$0xff] %vm2157_vm6, %v2109_v63 }
 0x401   : > { %v2515_v61 = vpop.f32.mrf.mxu1 }
 0x402   : > { %v2154_v19 = vadd.f32 %v2515_v61, %v2381_v9 }
 0x403   : > { %v2148_v52 = vpop.f32.mrf.mxu1 }
 0x404   : > { %2173 = vst.msk [vmem:[%s2760_s17 + $0x78] sm:$0xff] %vm2157_vm6, %v2154_v19  ;;  %v2149_v11 = vadd.f32 %v2381_v9, %v2148_v52 }
 0x406   : > { %2172 = vst.msk [vmem:[%s2760_s17 + $0x70] sm:$0xff] %vm2157_vm6, %v2149_v11 }
 0x407 PF: > { %s19_s13 = sadd.s32 1, %s2607_s13   ;;  %s3910_s30 = smov %s2599_s11 }
 0x408   : > { %p16_p12 = scmp.ge.s32.totalorder %s19_s13, 6   ;;  %s3911_s10 = smov %s2603_s12 }
 0x409   : > { %s3912_s11 = smov %s3915_s14  ;;  %s3913_s12 = smov %s3919_s15 }
 0x40a   :  { %18 = sbr.rel (!%p16_p12) target bundleno = 3 (0x3), region = 102 }

</bundles_post_ra>
